<compile_context>
chip_gen: v7x
topology: tpu7x:2x2x1
jax: 0.10.0
libtpu: 0.0.40
codegen_flags: <defaults>
</compile_context>

<pallas_src>
import jax
import jax.numpy as jnp
from jax.experimental import pallas as pl

LATENT_SIZE = 48
OUT_DIM = 2 * LATENT_SIZE          # 96
OUT_PAD = 128                      # lane-dense padded output width
HIDDEN = 512
N_PACKED_LAYERS = 4                # hidden layers living in the packed weight slab
HIDDEN_DIMS = [HIDDEN] * N_PACKED_LAYERS + [OUT_DIM]


def _round_up(x, m):
    return (x + m - 1) // m * m


def _make_prior_kernel(k_pad):
    """Build the fused 5-layer MLP kernel for a (padded) input width k_pad."""
    sizes = [k_pad] + [HIDDEN] * (N_PACKED_LAYERS - 1)   # K-dims of packed layers
    offs = [0]
    for s in sizes[:-1]:
        offs.append(offs[-1] + s)

    def kernel(x_ref, w_ref, w5_ref, b_ref, out_ref):
        # x_ref : (B, k_pad)            bf16
        # w_ref : (k_pad + 3*512, 512)  bf16   (W1..W4 stacked along rows)
        # w5_ref: (512, 128)            bf16   (W5 zero-padded 96 -> 128 cols)
        # b_ref : (8, 512)              bf16   (rows 0..3 = b1..b4, row 4 = b5 padded)
        h = x_ref[...]
        for i in range(N_PACKED_LAYERS):
            w = w_ref[offs[i]:offs[i] + sizes[i], :]          # static slice
            acc = jnp.dot(h, w, preferred_element_type=jnp.float32)
            acc = jnp.maximum(acc + b_ref[i:i + 1, :], 0.0)   # Linear + ReLU
            h = acc.astype(jnp.bfloat16)
        acc = jnp.dot(h, w5_ref[...], preferred_element_type=jnp.float32)
        acc = jnp.maximum(
            acc + b_ref[N_PACKED_LAYERS:N_PACKED_LAYERS + 1, :OUT_PAD], 0.0)
        out_ref[...] = acc.astype(out_ref.dtype)

    return kernel


def init_prior_params(key, in_dim):
    """Deterministic PyTorch-Linear-style init (uniform +-1/sqrt(fan_in)), f32."""
    cur_dim = in_dim + 256              # ' in MLP input : (x_t-1) '
    params = []
    last = cur_dim
    for nh in HIDDEN_DIMS:
        key, kw, kb = jax.random.split(key, 3)
        bound = 1.0 / jnp.sqrt(jnp.float32(last))
        w = jax.random.uniform(kw, (last, nh), jnp.float32, -bound, bound)
        b = jax.random.uniform(kb, (1, nh), jnp.float32, -bound, bound)
        params.append((w, b))
        last = nh
    return params


def pack_prior_params(params):
    """One-time packing/casting of module params into kernel-friendly bf16 slabs."""
    (w1, b1), (w2, b2), (w3, b3), (w4, b4), (w5, b5) = params
    k_raw = int(w1.shape[0])
    k_pad = _round_up(k_raw, 128)

    w1p = jnp.pad(w1, ((0, k_pad - k_raw), (0, 0)))                  # zero rows
    w_pack = jnp.concatenate([w1p, w2, w3, w4], axis=0).astype(jnp.bfloat16)
    w5p = jnp.pad(w5, ((0, 0), (0, OUT_PAD - w5.shape[1]))).astype(jnp.bfloat16)

    b5p = jnp.pad(b5, ((0, 0), (0, HIDDEN - b5.shape[1])))           # (1, 512)
    b_pack = jnp.concatenate(
        [b1, b2, b3, b4, b5p, jnp.zeros((3, HIDDEN), jnp.float32)],
        axis=0).astype(jnp.bfloat16)                                 # (8, 512)

    return {"w_pack": w_pack, "w5": w5p, "b_pack": b_pack,
            "k_raw": k_raw, "k_pad": k_pad}


def prior_forward(x_past, packed):
    """x_past: [B, D] with D = in_dim + 256.  Returns (mu, logvar), each [B, 48]."""
    B, D = x_past.shape
    k_raw, k_pad = packed["k_raw"], packed["k_pad"]
    assert D == k_raw, f"expected input dim {k_raw}, got {D}"

    x_pad = jnp.pad(x_past.astype(jnp.bfloat16), ((0, 0), (0, k_pad - D)))

    kernel = _make_prior_kernel(k_pad)

    flops = 2 * B * (k_pad * HIDDEN
                     + HIDDEN * HIDDEN * (N_PACKED_LAYERS - 1)
                     + HIDDEN * OUT_PAD)
    bytes_accessed = (x_pad.size * 2
                      + packed["w_pack"].size * 2
                      + packed["w5"].size * 2
                      + packed["b_pack"].size * 2
                      + B * OUT_PAD * 4)

    x_out = pl.pallas_call(
        kernel,
        out_shape=jax.ShapeDtypeStruct((B, OUT_PAD), jnp.float32),
        cost_estimate=pl.CostEstimate(flops=flops, transcendentals=0,
                                      bytes_accessed=bytes_accessed),
    )(x_pad, packed["w_pack"], packed["w5"], packed["b_pack"])

    mu = x_out[:, :LATENT_SIZE]
    logvar = x_out[:, LATENT_SIZE:OUT_DIM]
    return mu, logvar


def prior_forward_ref(x_past, params):
    """Pure-JAX f32 reference for correctness checking (module semantics)."""
    h = x_past
    for w, b in params:
        h = jnp.maximum(h @ w + b, 0.0)
    return h[..., :LATENT_SIZE], h[..., LATENT_SIZE:]


if __name__ == "__main__":
    key = jax.random.PRNGKey(0)
    k_param, k_x = jax.random.split(key)

    in_dim = 16                         # small synthetic motion-feature dim
    D = in_dim + 256                    # MLP input dim (matches module __init__)
    B = 8                               # small batch

    params = init_prior_params(k_param, in_dim)
    packed = pack_prior_params(params)
    x_past = jax.random.normal(k_x, (B, D), jnp.float32)

    mu, logvar = prior_forward(x_past, packed)
    mu = jax.block_until_ready(mu)
    logvar = jax.block_until_ready(logvar)

    mu_ref, logvar_ref = prior_forward_ref(x_past, params)
    assert mu.shape == (B, LATENT_SIZE) and logvar.shape == (B, LATENT_SIZE)
    # bf16 weights/activations (f32 accumulation) -> loosened tolerance vs f32 ref.
    assert jnp.allclose(mu, mu_ref, atol=2e-3, rtol=5e-2)
    assert jnp.allclose(logvar, logvar_ref, atol=2e-3, rtol=5e-2)

    print("KERNEL_OK")
</pallas_src>

<mosaic_0001>
module attributes {stable_mosaic.version = 11 : i64} {
  func.func @kernel(%arg0: memref<8x384xbf16, #tpu.memory_space<vmem>>, %arg1: memref<1920x512xbf16, #tpu.memory_space<vmem>>, %arg2: memref<512x128xbf16, #tpu.memory_space<vmem>>, %arg3: memref<8x512xbf16, #tpu.memory_space<vmem>>, %arg4: memref<8x128xf32, #tpu.memory_space<vmem>>) attributes {dimension_semantics = [], scalar_prefetch = 0 : i64, scratch_operands = 0 : i64, tpu.core_type = #tpu.core_type<tc>} {
    %c0 = arith.constant 0 : index
    %c0_0 = arith.constant 0 : index
    %0 = vector.load %arg0[%c0, %c0_0] : memref<8x384xbf16, #tpu.memory_space<vmem>>, vector<8x384xbf16>
    %c0_1 = arith.constant 0 : index
    %c0_2 = arith.constant 0 : index
    %1 = vector.load %arg1[%c0_1, %c0_2] : memref<1920x512xbf16, #tpu.memory_space<vmem>>, vector<384x512xbf16>
    %cst = arith.constant dense<0.000000e+00> : vector<8x512xf32>
    %2 = tpu.matmul %0, %1, %cst {dimension_numbers = #tpu.dot_dimension_numbers<[1], [0], [0], [1], [0, 0, 1, 1], [], []>} : vector<8x384xbf16>, vector<384x512xbf16>, vector<8x512xf32> -> vector<8x512xf32>
    %c0_3 = arith.constant 0 : index
    %c0_4 = arith.constant 0 : index
    %3 = vector.load %arg3[%c0_3, %c0_4] : memref<8x512xbf16, #tpu.memory_space<vmem>>, vector<1x512xbf16>
    %4 = arith.extf %3 : vector<1x512xbf16> to vector<1x512xf32>
    %5 = vector.broadcast %4 : vector<1x512xf32> to vector<8x512xf32>
    %6 = arith.addf %2, %5 : vector<8x512xf32>
    %cst_5 = arith.constant 0.000000e+00 : f32
    %7 = vector.broadcast %cst_5 : f32 to vector<8x512xf32>
    %8 = arith.maximumf %6, %7 : vector<8x512xf32>
    %9 = arith.truncf %8 : vector<8x512xf32> to vector<8x512xbf16>
    %c384 = arith.constant 384 : index
    %c0_6 = arith.constant 0 : index
    %10 = vector.load %arg1[%c384, %c0_6] : memref<1920x512xbf16, #tpu.memory_space<vmem>>, vector<512x512xbf16>
    %cst_7 = arith.constant dense<0.000000e+00> : vector<8x512xf32>
    %11 = tpu.matmul %9, %10, %cst_7 {dimension_numbers = #tpu.dot_dimension_numbers<[1], [0], [0], [1], [0, 0, 1, 1], [], []>} : vector<8x512xbf16>, vector<512x512xbf16>, vector<8x512xf32> -> vector<8x512xf32>
    %c1 = arith.constant 1 : index
    %c0_8 = arith.constant 0 : index
    %12 = vector.load %arg3[%c1, %c0_8] : memref<8x512xbf16, #tpu.memory_space<vmem>>, vector<1x512xbf16>
    %13 = arith.extf %12 : vector<1x512xbf16> to vector<1x512xf32>
    %14 = vector.broadcast %13 : vector<1x512xf32> to vector<8x512xf32>
    %15 = arith.addf %11, %14 : vector<8x512xf32>
    %cst_9 = arith.constant 0.000000e+00 : f32
    %16 = vector.broadcast %cst_9 : f32 to vector<8x512xf32>
    %17 = arith.maximumf %15, %16 : vector<8x512xf32>
    %18 = arith.truncf %17 : vector<8x512xf32> to vector<8x512xbf16>
    %c896 = arith.constant 896 : index
    %c0_10 = arith.constant 0 : index
    %19 = vector.load %arg1[%c896, %c0_10] : memref<1920x512xbf16, #tpu.memory_space<vmem>>, vector<512x512xbf16>
    %cst_11 = arith.constant dense<0.000000e+00> : vector<8x512xf32>
    %20 = tpu.matmul %18, %19, %cst_11 {dimension_numbers = #tpu.dot_dimension_numbers<[1], [0], [0], [1], [0, 0, 1, 1], [], []>} : vector<8x512xbf16>, vector<512x512xbf16>, vector<8x512xf32> -> vector<8x512xf32>
    %c2 = arith.constant 2 : index
    %c0_12 = arith.constant 0 : index
    %21 = vector.load %arg3[%c2, %c0_12] : memref<8x512xbf16, #tpu.memory_space<vmem>>, vector<1x512xbf16>
    %22 = arith.extf %21 : vector<1x512xbf16> to vector<1x512xf32>
    %23 = vector.broadcast %22 : vector<1x512xf32> to vector<8x512xf32>
    %24 = arith.addf %20, %23 : vector<8x512xf32>
    %cst_13 = arith.constant 0.000000e+00 : f32
    %25 = vector.broadcast %cst_13 : f32 to vector<8x512xf32>
    %26 = arith.maximumf %24, %25 : vector<8x512xf32>
    %27 = arith.truncf %26 : vector<8x512xf32> to vector<8x512xbf16>
    %c1408 = arith.constant 1408 : index
    %c0_14 = arith.constant 0 : index
    %28 = vector.load %arg1[%c1408, %c0_14] : memref<1920x512xbf16, #tpu.memory_space<vmem>>, vector<512x512xbf16>
    %cst_15 = arith.constant dense<0.000000e+00> : vector<8x512xf32>
    %29 = tpu.matmul %27, %28, %cst_15 {dimension_numbers = #tpu.dot_dimension_numbers<[1], [0], [0], [1], [0, 0, 1, 1], [], []>} : vector<8x512xbf16>, vector<512x512xbf16>, vector<8x512xf32> -> vector<8x512xf32>
    %c3 = arith.constant 3 : index
    %c0_16 = arith.constant 0 : index
    %30 = vector.load %arg3[%c3, %c0_16] : memref<8x512xbf16, #tpu.memory_space<vmem>>, vector<1x512xbf16>
    %31 = arith.extf %30 : vector<1x512xbf16> to vector<1x512xf32>
    %32 = vector.broadcast %31 : vector<1x512xf32> to vector<8x512xf32>
    %33 = arith.addf %29, %32 : vector<8x512xf32>
    %cst_17 = arith.constant 0.000000e+00 : f32
    %34 = vector.broadcast %cst_17 : f32 to vector<8x512xf32>
    %35 = arith.maximumf %33, %34 : vector<8x512xf32>
    %36 = arith.truncf %35 : vector<8x512xf32> to vector<8x512xbf16>
    %c0_18 = arith.constant 0 : index
    %c0_19 = arith.constant 0 : index
    %37 = vector.load %arg2[%c0_18, %c0_19] : memref<512x128xbf16, #tpu.memory_space<vmem>>, vector<512x128xbf16>
    %cst_20 = arith.constant dense<0.000000e+00> : vector<8x128xf32>
    %38 = tpu.matmul %36, %37, %cst_20 {dimension_numbers = #tpu.dot_dimension_numbers<[1], [0], [0], [1], [0, 0, 1, 1], [], []>} : vector<8x512xbf16>, vector<512x128xbf16>, vector<8x128xf32> -> vector<8x128xf32>
    %c4 = arith.constant 4 : index
    %c0_21 = arith.constant 0 : index
    %39 = vector.load %arg3[%c4, %c0_21] : memref<8x512xbf16, #tpu.memory_space<vmem>>, vector<1x128xbf16>
    %40 = arith.extf %39 : vector<1x128xbf16> to vector<1x128xf32>
    %41 = vector.broadcast %40 : vector<1x128xf32> to vector<8x128xf32>
    %42 = arith.addf %38, %41 : vector<8x128xf32>
    %cst_22 = arith.constant 0.000000e+00 : f32
    %43 = vector.broadcast %cst_22 : f32 to vector<8x128xf32>
    %44 = arith.maximumf %42, %43 : vector<8x128xf32>
    %c0_23 = arith.constant 0 : index
    %c0_24 = arith.constant 0 : index
    %45 = vector.load %arg4[%c0_23, %c0_24] : memref<8x128xf32, #tpu.memory_space<vmem>>, vector<8x128xf32>
    tpu.vector_store %arg4[%c0_23, %c0_24], %44 {strides = array<i32>} : memref<8x128xf32, #tpu.memory_space<vmem>>, vector<8x128xf32>,
    return
  }
}

</mosaic_0001>

<bundles_post_ra>
// kernel: tpu_custom_call.1
= control target key start
LH: loop header
LB: loop body
LE: loop exit
PB: predicated region body
PF: predicated region fallthrough
CT: control target
= control target key end

     0   :  { %9 = vsyncpa [#allocation3], 0  ;;  %s5755_s0 = inlined_call_operand.hbm [shape: bf16[8,384], index: 0, kind: input, shape index: {}]   ;;  %s5756_s1 = inlined_call_operand.hbm [shape: bf16[1920,512], index: 1, kind: input, shape index: {}]   ;;  %s5757_s2 = inlined_call_operand.hbm [shape: bf16[512,128], index: 2, kind: input, shape index: {}]   ;;  %s5758_s3 = inlined_call_operand.hbm [shape: bf16[8,512], index: 3, kind: input, shape index: {}]   ;;  %s5759_s4 = inlined_call_operand.hbm [shape: f32[8,128], index: 4, kind: output, shape index: {}]  }
   0x1   :  { %10 = vsyncpa [#allocation6], 0 }
   0x2   :  { %11 = vsyncpa [#allocation9], 0 }
   0x3   :  { %12 = vsyncpa [#allocation4], 0  ;;  %s5578_s15 = smov [#allocation5]   ;;  %s5460_s19 = scalar_lea.hbm %s5756_s1, 61440 }
   0x4   :  { %s28_s16 = sshll.u32 %s5578_s15, 4  ;;  %p5461_p0 = scmp.ne.s32.totalorder %s5756_s1, %s5460_s19  ;;  %s29_s16 = int_to_ptr.vmem [resolvable:$true] %s28_s16 }
   0x5   :  { %p5464_p1 = scmp.lt.u32.totalorder %s5460_s19, %s5756_s1 }
   0x7   :  { %p5466_p2 = pnand %p5464_p1, %p5461_p0 }
   0x9   :  { %5469 = shalt.err (!%p5466_p2)
}
   0xa   :  { %s5470_s24 = scalar_lea.vmem %s29_s16, 61440  ;;  %p5475_p4 = scmp.lt.s32.totalorder %s29_s16, %s29_s16 }
   0xb   :  { %p5471_p3 = scmp.ne.s32.totalorder %s29_s16, %s5470_s24  ;;  %p5476_p5 = scmp.lt.s32.totalorder %s5470_s24, %s5470_s24 }
   0xd   :  { %p5477_p6 = por %p5476_p5, %p5475_p4 }
   0xf   :  { %p5478_p7 = pnand %p5477_p6, %p5471_p3 }
  0x11   :  { %5481 = shalt.err (!%p5478_p7)
}
  0x12   :  { %s5579_s25 = smov 256   ;;  %s5580_s26 = smov 16  }
  0x13   :  { %34 = dma.hbm_to_vmem [thread:$0]  %s5756_s1, 61440, %s29_s16, [#allocation6], %s5579_s25, %s5579_s25, %s5580_s26  }
  0x14   :  { %s5581_s29 = smov [#allocation2]   ;;  %s5582_s5 = smov [#allocation7]  }
  0x15   :  { %s19_s30 = sshll.u32 %s5581_s29, 4  ;;  %s40_s6 = sshll.u32 %s5582_s5, 4  ;;  %s20_s30 = int_to_ptr.vmem [resolvable:$true] %s19_s30  ;;  %s41_s6 = int_to_ptr.vmem [resolvable:$true] %s40_s6 }
  0x16   :  { %s5482_s9 = scalar_lea.hbm %s5755_s0, 192 }
  0x17   :  { %p5483_p8 = scmp.ne.s32.totalorder %s5755_s0, %s5482_s9  ;;  %p5486_p9 = scmp.lt.u32.totalorder %s5482_s9, %s5755_s0 }
  0x19   :  { %p5488_p10 = pnand %p5486_p9, %p5483_p8 }
  0x1b   :  { %5491 = shalt.err (!%p5488_p10)
}
  0x1c   :  { %s5492_s1 = scalar_lea.vmem %s20_s30, 192  ;;  %p5497_p12 = scmp.lt.s32.totalorder %s20_s30, %s20_s30 }
  0x1d   :  { %p5493_p11 = scmp.ne.s32.totalorder %s20_s30, %s5492_s1  ;;  %p5498_p13 = scmp.lt.s32.totalorder %s5492_s1, %s5492_s1 }
  0x1f   :  { %p5499_p0 = por %p5498_p13, %p5497_p12 }
  0x21   :  { %p5500_p1 = pnand %p5499_p0, %p5493_p11 }
  0x23   :  { %5503 = shalt.err (!%p5500_p1)
}
  0x24   :  { %22 = dma.hbm_to_vmem [thread:$0]  %s5755_s0, 192, %s20_s30, [#allocation3]  }
  0x25   :  { %s5504_s18 = scalar_lea.hbm %s5757_s2, 4096 }
  0x26   :  { %p5505_p2 = scmp.ne.s32.totalorder %s5757_s2, %s5504_s18  ;;  %p5508_p3 = scmp.lt.u32.totalorder %s5504_s18, %s5757_s2 }
  0x28   :  { %p5510_p4 = pnand %p5508_p3, %p5505_p2 }
  0x2a   :  { %5513 = shalt.err (!%p5510_p4)
}
  0x2b   :  { %s5514_s23 = scalar_lea.vmem %s41_s6, 4096  ;;  %p5519_p6 = scmp.lt.s32.totalorder %s41_s6, %s41_s6 }
  0x2c   :  { %p5515_p5 = scmp.ne.s32.totalorder %s41_s6, %s5514_s23  ;;  %p5520_p7 = scmp.lt.s32.totalorder %s5514_s23, %s5514_s23 }
  0x2e   :  { %p5521_p8 = por %p5520_p7, %p5519_p6 }
  0x30   :  { %p5522_p9 = pnand %p5521_p8, %p5515_p5 }
  0x32   :  { %5525 = shalt.err (!%p5522_p9)
}
  0x33   :  { %s5583_s0 = smov 64   ;;  %s5584_s24 = smov 4  }
  0x34   :  { %46 = dma.hbm_to_vmem [thread:$0]  %s5757_s2, 4096, %s41_s6, [#allocation6], %s5583_s0, %s5583_s0, %s5584_s24  }
  0x35   :  { %s5585_s27 = smov [#allocation8]   ;;  %s5526_s5 = scalar_lea.hbm %s5758_s3, 256 }
  0x36   :  { %s53_s28 = sshll.u32 %s5585_s27, 4  ;;  %p5527_p10 = scmp.ne.s32.totalorder %s5758_s3, %s5526_s5  ;;  %s54_s28 = int_to_ptr.vmem [resolvable:$true] %s53_s28 }
  0x37   :  { %p5530_p11 = scmp.lt.u32.totalorder %s5526_s5, %s5758_s3 }
  0x39   :  { %p5532_p12 = pnand %p5530_p11, %p5527_p10 }
  0x3b   :  { %5535 = shalt.err (!%p5532_p12)
}
  0x3c   :  { %s5536_s11 = scalar_lea.vmem %s54_s28, 256  ;;  %p5541_p0 = scmp.lt.s32.totalorder %s54_s28, %s54_s28 }
  0x3d   :  { %p5537_p13 = scmp.ne.s32.totalorder %s54_s28, %s5536_s11  ;;  %p5542_p1 = scmp.lt.s32.totalorder %s5536_s11, %s5536_s11 }
  0x3f   :  { %p5543_p2 = por %p5542_p1, %p5541_p0 }
  0x41   :  { %p5544_p3 = pnand %p5543_p2, %p5537_p13 }
  0x43   :  { %5547 = shalt.err (!%p5544_p3)
}
  0x44   :  { %56 = dma.hbm_to_vmem [thread:$0]  %s5758_s3, 256, %s54_s28, [#allocation9]  }
  0x45   :  { %5570 = dma.done.wait [#allocation3], 192  }
  0x46   :  { %5571 = vsyncadd [#allocation3], 4294967104 }
  0x47   :  { %5572 = dma.done.wait [#allocation6], 65536  }
  0x48   :  { %5573 = vsyncadd [#allocation6], 4294901760 }
  0x49   :  { %5574 = dma.done.wait [#allocation9], 256  }
  0x4a   :  { %5575 = vsyncadd [#allocation9], 4294967040  ;;  %v4705_v0 = vld [vmem:[#allocation5 + $0x4] ss:$16 sps:$4 sm:$0xff]   ;;  %v4707_v1 = vld [vmem:[#allocation5] ss:$16 sps:$4 sm:$0xff]  }
  0x4b   :  { %681 = vmatprep.subr.bf16.mxu0 %v4705_v0  ;;  %v4708_v2 = vld [vmem:[#allocation5 + $0x24] ss:$16 sps:$4 sm:$0xff]   ;;  %v4710_v3 = vld [vmem:[#allocation5 + $0x20] ss:$16 sps:$4 sm:$0xff]   ;;  %v4729_v8 = vld [vmem:[#allocation5 + $0xc] ss:$16 sps:$4 sm:$0xff]  }
  0x4c   :  { %682 = vmatpush1.bf16.msra.mxu0 %v4707_v1  ;;  %v4711_v4 = vld [vmem:[#allocation5 + $0x44] ss:$16 sps:$4 sm:$0xff]   ;;  %v4713_v5 = vld [vmem:[#allocation5 + $0x40] ss:$16 sps:$4 sm:$0xff]   ;;  %v4731_v9 = vld [vmem:[#allocation5 + $0x8] ss:$16 sps:$4 sm:$0xff]   ;;  %763 = vmatprep.subr.bf16.mxu1 %v4729_v8 }
  0x4d   :  { %683 = vmatprep.subr.bf16.mxu0 %v4708_v2  ;;  %v4714_v6 = vld [vmem:[#allocation5 + $0x64] ss:$16 sps:$4 sm:$0xff]   ;;  %v4716_v7 = vld [vmem:[#allocation5 + $0x60] ss:$16 sps:$4 sm:$0xff]   ;;  %764 = vmatpush1.bf16.msra.mxu1 %v4731_v9  ;;  %v4735_v11 = vld [vmem:[#allocation5 + $0x2c] ss:$16 sps:$4 sm:$0xff]  }
  0x4e   :  { %v4717_v10 = vld [vmem:[#allocation5 + $0x84] ss:$16 sps:$4 sm:$0xff]   ;;  %v4737_v12 = vld [vmem:[#allocation5 + $0x28] ss:$16 sps:$4 sm:$0xff]   ;;  %v4719_v13 = vld [vmem:[#allocation5 + $0x80] ss:$16 sps:$4 sm:$0xff]   ;;  %765 = vmatprep.subr.bf16.mxu1 %v4735_v11 }
  0x4f   :  { %v4720_v14 = vld [vmem:[#allocation5 + $0xa4] ss:$16 sps:$4 sm:$0xff]   ;;  %v4741_v15 = vld [vmem:[#allocation5 + $0x4c] ss:$16 sps:$4 sm:$0xff]   ;;  %v4743_v16 = vld [vmem:[#allocation5 + $0x48] ss:$16 sps:$4 sm:$0xff]  }
  0x50   :  { %684 = vmatpush1.bf16.msra.mxu0 %v4710_v3  ;;  %v4722_v17 = vld [vmem:[#allocation5 + $0xa0] ss:$16 sps:$4 sm:$0xff]   ;;  %v4747_v18 = vld [vmem:[#allocation5 + $0x6c] ss:$16 sps:$4 sm:$0xff]   ;;  %v4723_v19 = vld [vmem:[#allocation5 + $0xc4] ss:$16 sps:$4 sm:$0xff]  }
  0x51   :  { %685 = vmatprep.subr.bf16.mxu0 %v4711_v4  ;;  %766 = vmatpush1.bf16.msra.mxu1 %v4737_v12  ;;  %v4749_v20 = vld [vmem:[#allocation5 + $0x68] ss:$16 sps:$4 sm:$0xff]   ;;  %v4725_v21 = vld [vmem:[#allocation5 + $0xc0] ss:$16 sps:$4 sm:$0xff]   ;;  %v4753_v22 = vld [vmem:[#allocation5 + $0x8c] ss:$16 sps:$4 sm:$0xff]  }
  0x52   :  { %767 = vmatprep.subr.bf16.mxu1 %v4741_v15  ;;  %v4726_v23 = vld [vmem:[#allocation5 + $0xe4] ss:$16 sps:$4 sm:$0xff]   ;;  %v4755_v24 = vld [vmem:[#allocation5 + $0x88] ss:$16 sps:$4 sm:$0xff]   ;;  %v4728_v25 = vld [vmem:[#allocation5 + $0xe0] ss:$16 sps:$4 sm:$0xff]  }
  0x53   :  { %v4759_v26 = vld [vmem:[#allocation5 + $0xac] ss:$16 sps:$4 sm:$0xff]   ;;  %v4732_v27 = vld [vmem:[#allocation5 + $0x104] ss:$16 sps:$4 sm:$0xff]   ;;  %v4761_v28 = vld [vmem:[#allocation5 + $0xa8] ss:$16 sps:$4 sm:$0xff]  }
  0x54   :  { %686 = vmatpush1.bf16.msra.mxu0 %v4713_v5  ;;  %v4734_v29 = vld [vmem:[#allocation5 + $0x100] ss:$16 sps:$4 sm:$0xff]   ;;  %v4765_v30 = vld [vmem:[#allocation5 + $0xcc] ss:$16 sps:$4 sm:$0xff]   ;;  %v4738_v31 = vld [vmem:[#allocation5 + $0x124] ss:$16 sps:$4 sm:$0xff]  }
  0x55   :  { %687 = vmatprep.subr.bf16.mxu0 %v4714_v6  ;;  %768 = vmatpush1.bf16.msra.mxu1 %v4743_v16  ;;  %v70_v32 = vld [vmem:[#allocation2] sm:$0xff]  ;;  %v4740_v33 = vld [vmem:[#allocation5 + $0x120] ss:$16 sps:$4 sm:$0xff]   ;;  %v4771_v36 = vld [vmem:[#allocation5 + $0xec] ss:$16 sps:$4 sm:$0xff]   ;;  %s5587_s3 = smov [#allocation10]  }
  0x56   :  { %769 = vmatprep.subr.bf16.mxu1 %v4747_v18  ;;  %v4767_v34 = vld [vmem:[#allocation5 + $0xc8] ss:$16 sps:$4 sm:$0xff]   ;;  %v4089_v35 = vcombine.high %v70_v32, %v70_v32  ;;  %v4744_v37 = vld [vmem:[#allocation5 + $0x144] ss:$16 sps:$4 sm:$0xff]   ;;  %v4746_v38 = vld [vmem:[#allocation5 + $0x140] ss:$16 sps:$4 sm:$0xff]   ;;  %v4088_v62 = vcombine.low %v70_v32, %v70_v32 }
  0x57   :  { %v4773_v39 = vld [vmem:[#allocation5 + $0xe8] ss:$16 sps:$4 sm:$0xff]   ;;  %v4777_v40 = vld [vmem:[#allocation5 + $0x10c] ss:$16 sps:$4 sm:$0xff]   ;;  %v4750_v41 = vld [vmem:[#allocation5 + $0x164] ss:$16 sps:$4 sm:$0xff]  }
  0x58   :  { %688 = vmatpush1.bf16.msra.mxu0 %v4716_v7  ;;  %713 = vmatprep.mubr.bf16.mxu0 %v4089_v35  ;;  %v4752_v42 = vld [vmem:[#allocation5 + $0x160] ss:$16 sps:$4 sm:$0xff]   ;;  %v4779_v43 = vld [vmem:[#allocation5 + $0x108] ss:$16 sps:$4 sm:$0xff]   ;;  %v4785_v44 = vld [vmem:[#allocation5 + $0x12c] ss:$16 sps:$4 sm:$0xff]  }
  0x59   :  { %689 = vmatprep.subr.bf16.mxu0 %v4717_v10  ;;  %770 = vmatpush1.bf16.msra.mxu1 %v4749_v20  ;;  %v4756_v45 = vld [vmem:[#allocation5 + $0x184] ss:$16 sps:$4 sm:$0xff]   ;;  %v4758_v46 = vld [vmem:[#allocation5 + $0x180] ss:$16 sps:$4 sm:$0xff]   ;;  %v4787_v47 = vld [vmem:[#allocation5 + $0x128] ss:$16 sps:$4 sm:$0xff]  }
  0x5a   :  { %771 = vmatprep.subr.bf16.mxu1 %v4753_v22  ;;  %795 = vmatprep.mubr.bf16.mxu1 %v4089_v35  ;;  %v4791_v48 = vld [vmem:[#allocation5 + $0x14c] ss:$16 sps:$4 sm:$0xff]   ;;  %v4762_v49 = vld [vmem:[#allocation5 + $0x1a4] ss:$16 sps:$4 sm:$0xff]   ;;  %v4764_v50 = vld [vmem:[#allocation5 + $0x1a0] ss:$16 sps:$4 sm:$0xff]  }
  0x5b   :  { %v4793_v51 = vld [vmem:[#allocation5 + $0x148] ss:$16 sps:$4 sm:$0xff]   ;;  %v4797_v52 = vld [vmem:[#allocation5 + $0x16c] ss:$16 sps:$4 sm:$0xff]   ;;  %v4768_v53 = vld [vmem:[#allocation5 + $0x1c4] ss:$16 sps:$4 sm:$0xff]  }
  0x5c   :  { %690 = vmatpush1.bf16.msra.mxu0 %v4719_v13  ;;  %v4770_v54 = vld [vmem:[#allocation5 + $0x1c0] ss:$16 sps:$4 sm:$0xff]   ;;  %v4799_v55 = vld [vmem:[#allocation5 + $0x168] ss:$16 sps:$4 sm:$0xff]   ;;  %v4803_v56 = vld [vmem:[#allocation5 + $0x18c] ss:$16 sps:$4 sm:$0xff]  }
  0x5d   :  { %691 = vmatprep.subr.bf16.mxu0 %v4720_v14  ;;  %772 = vmatpush1.bf16.msra.mxu1 %v4755_v24  ;;  %v4774_v57 = vld [vmem:[#allocation5 + $0x1e4] ss:$16 sps:$4 sm:$0xff]   ;;  %v4805_v58 = vld [vmem:[#allocation5 + $0x188] ss:$16 sps:$4 sm:$0xff]   ;;  %v4776_v59 = vld [vmem:[#allocation5 + $0x1e0] ss:$16 sps:$4 sm:$0xff]  }
  0x5e   :  { %773 = vmatprep.subr.bf16.mxu1 %v4759_v26  ;;  %v4809_v60 = vld [vmem:[#allocation5 + $0x1ac] ss:$16 sps:$4 sm:$0xff]   ;;  %v4784_v61 = vld [vmem:[#allocation5 + $0x204] ss:$16 sps:$4 sm:$0xff]   ;;  %v4811_v63 = vld [vmem:[#allocation5 + $0x1a8] ss:$16 sps:$4 sm:$0xff]  }
  0x5f   :  { %v4782_v0 = vld [vmem:[#allocation5 + $0x200] ss:$16 sps:$4 sm:$0xff]   ;;  %v4815_v1 = vld [vmem:[#allocation5 + $0x1cc] ss:$16 sps:$4 sm:$0xff]   ;;  %v4790_v2 = vld [vmem:[#allocation5 + $0x224] ss:$16 sps:$4 sm:$0xff]  }
  0x60   :  { %692 = vmatpush1.bf16.msra.mxu0 %v4722_v17  ;;  %v4817_v3 = vld [vmem:[#allocation5 + $0x1c8] ss:$16 sps:$4 sm:$0xff]   ;;  %v4788_v4 = vld [vmem:[#allocation5 + $0x220] ss:$16 sps:$4 sm:$0xff]   ;;  %v4821_v5 = vld [vmem:[#allocation5 + $0x1ec] ss:$16 sps:$4 sm:$0xff]  }
  0x61   :  { %693 = vmatprep.subr.bf16.mxu0 %v4723_v19  ;;  %774 = vmatpush1.bf16.msra.mxu1 %v4761_v28  ;;  %v4796_v6 = vld [vmem:[#allocation5 + $0x244] ss:$16 sps:$4 sm:$0xff]   ;;  %v5586_v7 = vmov 0   ;;  %v4823_v8 = vld [vmem:[#allocation5 + $0x1e8] ss:$16 sps:$4 sm:$0xff]   ;;  %s4077_s12 = sshll.u32 %s5587_s3, 4  ;;  %s4078_s12 = int_to_ptr.vmem [resolvable:$true] %s4077_s12 }
  0x62   :  { %775 = vmatprep.subr.bf16.mxu1 %v4765_v30  ;;  %v4794_v9 = vld [vmem:[#allocation5 + $0x240] ss:$16 sps:$4 sm:$0xff]   ;;  %v4829_v10 = vld [vmem:[#allocation5 + $0x20c] ss:$16 sps:$4 sm:$0xff]   ;;  %v4802_v11 = vld [vmem:[#allocation5 + $0x264] ss:$16 sps:$4 sm:$0xff]   ;;  %p5553_p5 = scmp.lt.s32.totalorder %s4078_s12, %s4078_s12 }
  0x63   :  { %v4827_v12 = vld [vmem:[#allocation5 + $0x208] ss:$16 sps:$4 sm:$0xff]   ;;  %v4800_v13 = vld [vmem:[#allocation5 + $0x260] ss:$16 sps:$4 sm:$0xff]   ;;  %v4833_v14 = vld [vmem:[#allocation5 + $0x22c] ss:$16 sps:$4 sm:$0xff]  }
  0x64   :  { %694 = vmatpush1.bf16.msra.mxu0 %v4725_v21  ;;  %v4808_v15 = vld [vmem:[#allocation5 + $0x284] ss:$16 sps:$4 sm:$0xff]   ;;  %v4831_v16 = vld [vmem:[#allocation5 + $0x228] ss:$16 sps:$4 sm:$0xff]   ;;  %v4806_v17 = vld [vmem:[#allocation5 + $0x280] ss:$16 sps:$4 sm:$0xff]  }
  0x65   :  { %695 = vmatprep.subr.bf16.mxu0 %v4726_v23  ;;  %776 = vmatpush1.bf16.msra.mxu1 %v4767_v34  ;;  %v4836_v18 = vld [vmem:[#allocation5 + $0x24c] ss:$16 sps:$4 sm:$0xff]   ;;  %v4814_v19 = vld [vmem:[#allocation5 + $0x2a4] ss:$16 sps:$4 sm:$0xff]   ;;  %v4834_v20 = vld [vmem:[#allocation5 + $0x248] ss:$16 sps:$4 sm:$0xff]  }
  0x66   :  { %777 = vmatprep.subr.bf16.mxu1 %v4771_v36  ;;  %v4812_v21 = vld [vmem:[#allocation5 + $0x2a0] ss:$16 sps:$4 sm:$0xff]   ;;  %v4839_v22 = vld [vmem:[#allocation5 + $0x26c] ss:$16 sps:$4 sm:$0xff]   ;;  %v4820_v23 = vld [vmem:[#allocation5 + $0x2c4] ss:$16 sps:$4 sm:$0xff]  }
  0x67   :  { %v4837_v24 = vld [vmem:[#allocation5 + $0x268] ss:$16 sps:$4 sm:$0xff]   ;;  %v4842_v26 = vld [vmem:[#allocation5 + $0x28c] ss:$16 sps:$4 sm:$0xff]   ;;  %v4852_v35 = vld [vmem:[#allocation5 + $0x300] ss:$16 sps:$4 sm:$0xff]  }
  0x68   :  { %696 = vmatpush1.bf16.msra.mxu0 %v4728_v25  ;;  %v4818_v25 = vld [vmem:[#allocation5 + $0x2c0] ss:$16 sps:$4 sm:$0xff]   ;;  %v4840_v28 = vld [vmem:[#allocation5 + $0x288] ss:$16 sps:$4 sm:$0xff]   ;;  %v4845_v30 = vld [vmem:[#allocation5 + $0x2ac] ss:$16 sps:$4 sm:$0xff]  }
  0x69   :  { %697 = vmatprep.subr.bf16.mxu0 %v4732_v27  ;;  %778 = vmatpush1.bf16.msra.mxu1 %v4773_v39  ;;  %v4826_v27 = vld [vmem:[#allocation5 + $0x2e4] ss:$16 sps:$4 sm:$0xff]   ;;  %v4830_v32 = vld [vmem:[#allocation2 + $0x8] ss:$0 sps:$4 sm:$0xff]   ;;  %v4858_v39 = vld [vmem:[#allocation5 + $0x320] ss:$16 sps:$4 sm:$0xff]  }
  0x6a   :  { %779 = vmatprep.subr.bf16.mxu1 %v4777_v40  ;;  %v4848_v34 = vld [vmem:[#allocation5 + $0x2cc] ss:$16 sps:$4 sm:$0xff]   ;;  %v4860_v36 = vld [vmem:[#allocation5 + $0x324] ss:$16 sps:$4 sm:$0xff]   ;;  %v4849_v40 = vld [vmem:[#allocation5 + $0x2e8] ss:$16 sps:$4 sm:$0xff]  }
  0x6b   :  { %s5548_s13 = scalar_lea.vmem %s4078_s12, 128 }
  0x6c   :  { %698 = vmatpush1.bf16.msra.mxu0 %v4734_v29  ;;  %v4824_v29 = vld [vmem:[#allocation5 + $0x2e0] ss:$16 sps:$4 sm:$0xff]   ;;  %p5549_p4 = scmp.ne.s32.totalorder %s4078_s12, %s5548_s13  ;;  %p5554_p6 = scmp.lt.s32.totalorder %s5548_s13, %s5548_s13 }
  0x6d   :  { %699 = vmatprep.subr.bf16.mxu0 %v4738_v31  ;;  %780 = vmatpush1.bf16.msra.mxu1 %v4779_v43  ;;  %v4854_v31 = vld [vmem:[#allocation5 + $0x304] ss:$16 sps:$4 sm:$0xff]   ;;  %v4864_v43 = vld [vmem:[#allocation5 + $0x340] ss:$16 sps:$4 sm:$0xff]  }
  0x6e   :  { %781 = vmatprep.subr.bf16.mxu1 %v4785_v44  ;;  %v4872_v44 = vld [vmem:[#allocation5 + $0x364] ss:$16 sps:$4 sm:$0xff]   ;;  %p5555_p7 = por %p5554_p6, %p5553_p5 }
  0x70   :  { %700 = vmatpush1.bf16.msra.mxu0 %v4740_v33  ;;  %v4843_v33 = vld [vmem:[#allocation5 + $0x2a8] ss:$16 sps:$4 sm:$0xff]   ;;  %p5556_p8 = pnand %p5555_p7, %p5549_p4 }
  0x71   :  { %701 = vmatprep.subr.bf16.mxu0 %v4744_v37  ;;  %782 = vmatpush1.bf16.msra.mxu1 %v4787_v47  ;;  %v4846_v37 = vld [vmem:[#allocation5 + $0x2c8] ss:$16 sps:$4 sm:$0xff]   ;;  %v4870_v47 = vld [vmem:[#allocation5 + $0x360] ss:$16 sps:$4 sm:$0xff]  }
  0x72   :  { %783 = vmatprep.subr.bf16.mxu1 %v4791_v48  ;;  %v4878_v48 = vld [vmem:[#allocation5 + $0x384] ss:$16 sps:$4 sm:$0xff]  }
  0x74   :  { %702 = vmatpush1.bf16.msra.mxu0 %v4746_v38  ;;  %v4851_v38 = vld [vmem:[#allocation5 + $0x2ec] ss:$16 sps:$4 sm:$0xff]  }
  0x75   :  { %703 = vmatprep.subr.bf16.mxu0 %v4750_v41  ;;  %784 = vmatpush1.bf16.msra.mxu1 %v4793_v51  ;;  %v4866_v41 = vld [vmem:[#allocation5 + $0x344] ss:$16 sps:$4 sm:$0xff]   ;;  %v4876_v51 = vld [vmem:[#allocation5 + $0x380] ss:$16 sps:$4 sm:$0xff]  }
  0x76   :  { %785 = vmatprep.subr.bf16.mxu1 %v4797_v52  ;;  %v4884_v52 = vld [vmem:[#allocation5 + $0x3a4] ss:$16 sps:$4 sm:$0xff]  }
  0x78   :  { %704 = vmatpush1.bf16.msra.mxu0 %v4752_v42  ;;  %v4857_v42 = vld [vmem:[#allocation5 + $0x30c] ss:$16 sps:$4 sm:$0xff]  }
  0x79   :  { %705 = vmatprep.subr.bf16.mxu0 %v4756_v45  ;;  %786 = vmatpush1.bf16.msra.mxu1 %v4799_v55  ;;  %v4855_v45 = vld [vmem:[#allocation5 + $0x308] ss:$16 sps:$4 sm:$0xff]   ;;  %v4882_v55 = vld [vmem:[#allocation5 + $0x3a0] ss:$16 sps:$4 sm:$0xff]  }
  0x7a   :  { %787 = vmatprep.subr.bf16.mxu1 %v4803_v56  ;;  %v4890_v56 = vld [vmem:[#allocation5 + $0x3c4] ss:$16 sps:$4 sm:$0xff]  }
  0x7c   :  { %706 = vmatpush1.bf16.msra.mxu0 %v4758_v46  ;;  %v4863_v46 = vld [vmem:[#allocation5 + $0x32c] ss:$16 sps:$4 sm:$0xff]  }
  0x7d   :  { %707 = vmatprep.subr.bf16.mxu0 %v4762_v49  ;;  %788 = vmatpush1.bf16.msra.mxu1 %v4805_v58  ;;  %v4861_v49 = vld [vmem:[#allocation5 + $0x328] ss:$16 sps:$4 sm:$0xff]   ;;  %v4881_v58 = vld [vmem:[#allocation5 + $0x38c] ss:$16 sps:$4 sm:$0xff]  }
  0x7e   :  { %789 = vmatprep.subr.bf16.mxu1 %v4809_v60  ;;  %v4896_v60 = vld [vmem:[#allocation5 + $0x3e4] ss:$16 sps:$4 sm:$0xff]  }
  0x80   :  { %708 = vmatpush1.bf16.msra.mxu0 %v4764_v50  ;;  %v4869_v50 = vld [vmem:[#allocation5 + $0x34c] ss:$16 sps:$4 sm:$0xff]  }
  0x81   :  { %709 = vmatprep.subr.bf16.mxu0 %v4768_v53  ;;  %790 = vmatpush1.bf16.msra.mxu1 %v4811_v63  ;;  %v4867_v53 = vld [vmem:[#allocation5 + $0x348] ss:$16 sps:$4 sm:$0xff]   ;;  %v4894_v63 = vld [vmem:[#allocation5 + $0x3e0] ss:$16 sps:$4 sm:$0xff]  }
  0x82   :  { %791 = vmatprep.subr.bf16.mxu1 %v4815_v1  ;;  %v4885_v1 = vld [vmem:[#allocation5 + $0x3a8] ss:$16 sps:$4 sm:$0xff]  }
  0x84   :  { %710 = vmatpush1.bf16.msra.mxu0 %v4770_v54  ;;  %v4875_v54 = vld [vmem:[#allocation5 + $0x36c] ss:$16 sps:$4 sm:$0xff]  }
  0x85   :  { %711 = vmatprep.subr.bf16.mxu0 %v4774_v57  ;;  %792 = vmatpush1.bf16.msra.mxu1 %v4817_v3  ;;  %v4873_v57 = vld [vmem:[#allocation5 + $0x368] ss:$16 sps:$4 sm:$0xff]   ;;  %v4900_v3 = vld [vmem:[#allocation5 + $0x400] ss:$16 sps:$4 sm:$0xff]  }
  0x86   :  { %793 = vmatprep.subr.bf16.mxu1 %v4821_v5  ;;  %v4891_v5 = vld [vmem:[#allocation5 + $0x3c8] ss:$16 sps:$4 sm:$0xff]  }
  0x88   :  { %712 = vmatpush1.bf16.msra.mxu0 %v4776_v59  ;;  %v4888_v59 = vld [vmem:[#allocation5 + $0x3c0] ss:$16 sps:$4 sm:$0xff]  }
  0x89   :  { %722 = vmatprep.subr.bf16.mxu0 %v4784_v61  ;;  %794 = vmatpush1.bf16.msra.mxu1 %v4823_v8  ;;  %v4879_v61 = vld [vmem:[#allocation5 + $0x388] ss:$16 sps:$4 sm:$0xff]   ;;  %v4914_v8 = vld [vmem:[#allocation5 + $0x444] ss:$16 sps:$4 sm:$0xff]  }
  0x8a   :  { %804 = vmatprep.subr.bf16.mxu1 %v4829_v10  ;;  %v4905_v10 = vld [vmem:[#allocation5 + $0x40c] ss:$16 sps:$4 sm:$0xff]  }
  0x8b   :  { %714 = vmatmul.mubr.bf16.vlgmr.msra.gmra.mrb[0].mxu0 %v4088_v62 }
  0x8c   :  { %723 = vmatpush1.bf16.msra.mxu0 %v4782_v0  ;;  %754 = vmatprep.mubr.bf16.mxu0 %v5586_v7  ;;  %v4902_v0 = vld [vmem:[#allocation5 + $0x404] ss:$16 sps:$4 sm:$0xff]  }
  0x8d   :  { %724 = vmatprep.subr.bf16.mxu0 %v4790_v2  ;;  %796 = vmatmul.mubr.bf16.vlgmr.msra.gmra.mrb[0].mxu1 %v4088_v62  ;;  %v4887_v62 = vld [vmem:[#allocation5 + $0x3ac] ss:$16 sps:$4 sm:$0xff]  }
  0x8e   :  { %805 = vmatpush1.bf16.msra.mxu1 %v4827_v12  ;;  %836 = vmatprep.mubr.bf16.mxu1 %v5586_v7  ;;  %v4893_v2 = vld [vmem:[#allocation5 + $0x3cc] ss:$16 sps:$4 sm:$0xff]   ;;  %v4906_v7 = vld [vmem:[#allocation5 + $0x420] ss:$16 sps:$4 sm:$0xff]   ;;  %v4920_v12 = vld [vmem:[#allocation5 + $0x464] ss:$16 sps:$4 sm:$0xff]  }
  0x8f   :  { %806 = vmatprep.subr.bf16.mxu1 %v4833_v14  ;;  %v4911_v14 = vld [vmem:[#allocation5 + $0x42c] ss:$16 sps:$4 sm:$0xff]  }
  0x90   :  { %725 = vmatpush1.bf16.msra.mxu0 %v4788_v4  ;;  %v4908_v4 = vld [vmem:[#allocation5 + $0x424] ss:$16 sps:$4 sm:$0xff]  }
  0x91   :  { %726 = vmatprep.subr.bf16.mxu0 %v4796_v6  ;;  %v4899_v6 = vld [vmem:[#allocation5 + $0x3ec] ss:$16 sps:$4 sm:$0xff]  }
  0x92   :  { %807 = vmatpush1.bf16.msra.mxu1 %v4831_v16  ;;  %v4926_v16 = vld [vmem:[#allocation5 + $0x484] ss:$16 sps:$4 sm:$0xff]  }
  0x93   :  { %808 = vmatprep.subr.bf16.mxu1 %v4836_v18  ;;  %v4917_v18 = vld [vmem:[#allocation5 + $0x44c] ss:$16 sps:$4 sm:$0xff]  }
  0x94   :  { %727 = vmatpush1.bf16.msra.mxu0 %v4794_v9  ;;  %v4897_v9 = vld [vmem:[#allocation5 + $0x3e8] ss:$16 sps:$4 sm:$0xff]  }
  0x95   :  { %728 = vmatprep.subr.bf16.mxu0 %v4802_v11  ;;  %v4912_v11 = vld [vmem:[#allocation5 + $0x440] ss:$16 sps:$4 sm:$0xff]  }
  0x96   :  { %809 = vmatpush1.bf16.msra.mxu1 %v4834_v20  ;;  %v4932_v20 = vld [vmem:[#allocation5 + $0x4a4] ss:$16 sps:$4 sm:$0xff]  }
  0x97   :  { %810 = vmatprep.subr.bf16.mxu1 %v4839_v22  ;;  %v4923_v22 = vld [vmem:[#allocation5 + $0x46c] ss:$16 sps:$4 sm:$0xff]  }
  0x98   :  { %729 = vmatpush1.bf16.msra.mxu0 %v4800_v13  ;;  %v4903_v13 = vld [vmem:[#allocation5 + $0x408] ss:$16 sps:$4 sm:$0xff]  }
  0x99   :  { %730 = vmatprep.subr.bf16.mxu0 %v4808_v15  ;;  %v4918_v15 = vld [vmem:[#allocation5 + $0x460] ss:$16 sps:$4 sm:$0xff]  }
  0x9a   :  { %811 = vmatpush1.bf16.msra.mxu1 %v4837_v24  ;;  %v4921_v24 = vld [vmem:[#allocation5 + $0x468] ss:$16 sps:$4 sm:$0xff]  }
  0x9b   :  { %812 = vmatprep.subr.bf16.mxu1 %v4842_v26  ;;  %v4927_v26 = vld [vmem:[#allocation5 + $0x488] ss:$16 sps:$4 sm:$0xff]  }
  0x9c   :  { %731 = vmatpush1.bf16.msra.mxu0 %v4806_v17  ;;  %v4909_v17 = vld [vmem:[#allocation5 + $0x428] ss:$16 sps:$4 sm:$0xff]  }
  0x9d   :  { %732 = vmatprep.subr.bf16.mxu0 %v4814_v19  ;;  %v4924_v19 = vld [vmem:[#allocation5 + $0x480] ss:$16 sps:$4 sm:$0xff]  }
  0x9e   :  { %813 = vmatpush1.bf16.msra.mxu1 %v4840_v28  ;;  %v4933_v28 = vld [vmem:[#allocation5 + $0x4a8] ss:$16 sps:$4 sm:$0xff]  }
  0x9f   :  { %814 = vmatprep.subr.bf16.mxu1 %v4845_v30  ;;  %v4941_v30 = vld [vmem:[#allocation5 + $0x4cc] ss:$16 sps:$4 sm:$0xff]  }
  0xa0   :  { %733 = vmatpush1.bf16.msra.mxu0 %v4812_v21  ;;  %v4915_v21 = vld [vmem:[#allocation5 + $0x448] ss:$16 sps:$4 sm:$0xff]  }
  0xa1   :  { %734 = vmatprep.subr.bf16.mxu0 %v4820_v23  ;;  %v4930_v23 = vld [vmem:[#allocation5 + $0x4a0] ss:$16 sps:$4 sm:$0xff]  }
  0xa2   :  { %815 = vmatpush1.bf16.msra.mxu1 %v4843_v33  ;;  %v4944_v33 = vld [vmem:[#allocation5 + $0x4e4] ss:$16 sps:$4 sm:$0xff]  }
  0xa3   :  { %816 = vmatprep.subr.bf16.mxu1 %v4848_v34  ;;  %v4947_v34 = vld [vmem:[#allocation5 + $0x4ec] ss:$16 sps:$4 sm:$0xff]  }
  0xa4   :  { %735 = vmatpush1.bf16.msra.mxu0 %v4818_v25  ;;  %v4929_v25 = vld [vmem:[#allocation5 + $0x48c] ss:$16 sps:$4 sm:$0xff]  }
  0xa5   :  { %736 = vmatprep.subr.bf16.mxu0 %v4826_v27  ;;  %v4935_v27 = vld [vmem:[#allocation5 + $0x4ac] ss:$16 sps:$4 sm:$0xff]  }
  0xa6   :  { %817 = vmatpush1.bf16.msra.mxu1 %v4846_v37  ;;  %v4950_v37 = vld [vmem:[#allocation5 + $0x504] ss:$16 sps:$4 sm:$0xff]  }
  0xa7   :  { %818 = vmatprep.subr.bf16.mxu1 %v4851_v38  ;;  %v4953_v38 = vld [vmem:[#allocation5 + $0x50c] ss:$16 sps:$4 sm:$0xff]  }
  0xa8   :  { %737 = vmatpush1.bf16.msra.mxu0 %v4824_v29  ;;  %v4938_v29 = vld [vmem:[#allocation5 + $0x4c4] ss:$16 sps:$4 sm:$0xff]  }
  0xa9   :  { %1637 = vmatprep.subr.bf16.mxu0 %v4854_v31  ;;  %v4936_v31 = vld [vmem:[#allocation5 + $0x4c0] ss:$16 sps:$4 sm:$0xff]  }
  0xaa   :  { %819 = vmatpush1.bf16.msra.mxu1 %v4849_v40 }
  0xab   :  { %755 = vmatmul.mubr.bf16.vlgmr.msra.gmra.mrb[0].mxu0 %v4830_v32  ;;  %1719 = vmatprep.subr.bf16.mxu1 %v4857_v42 }
  0xac   :  { %1638 = vmatpush1.bf16.msra.mxu0 %v4852_v35  ;;  %v4942_v35 = vld [vmem:[#allocation5 + $0x4e0] ss:$16 sps:$4 sm:$0xff]  }
  0xad   :  { %1639 = vmatprep.subr.bf16.mxu0 %v4860_v36  ;;  %837 = vmatmul.mubr.bf16.vlgmr.msra.gmra.mrb[0].mxu1 %v4830_v32  ;;  %v4939_v32 = vld [vmem:[#allocation5 + $0x4c8] ss:$16 sps:$4 sm:$0xff]  }
  0xae   :  { %1720 = vmatpush1.bf16.msra.mxu1 %v4855_v45  ;;  %v4945_v36 = vld [vmem:[#allocation5 + $0x4e8] ss:$16 sps:$4 sm:$0xff]  }
  0xaf   :  { %1721 = vmatprep.subr.bf16.mxu1 %v4863_v46 }
  0xb0   :  { %1640 = vmatpush1.bf16.msra.mxu0 %v4858_v39  ;;  %v174_v39 = vlaneseq }
  0xb1   :  { %1641 = vmatprep.subr.bf16.mxu0 %v4866_v41  ;;  %v5663_v41 = vld [vmem:[#allocation8] sm:$0x11] }
  0xb2   :  { %1722 = vmatpush1.bf16.msra.mxu1 %v4861_v49  ;;  %v5661_v40 = vshrl.u32 %v174_v39, 7  ;;  %v170_v42 = vunpack.c.l.bf16 %v5663_v41  ;;  %v5002_v39 = vld [vmem:[#allocation5 + $0x620] ss:$16 sps:$4 sm:$0xff]  }
  0xb3   :  { %1723 = vmatprep.subr.bf16.mxu1 %v4869_v50 }
  0xb4   :  { %1642 = vmatpush1.bf16.msra.mxu0 %v4864_v43  ;;  %v5667_v43 = vsub.s32 0, %v5661_v40 }
  0xb5   :  { %1643 = vmatprep.subr.bf16.mxu0 %v4872_v44  ;;  %v171_v44 = vunpack.c.h.bf16 %v5663_v41 }
  0xb6   :  { %1724 = vmatpush1.bf16.msra.mxu1 %v4867_v53  ;;  %v177_v45 = vrot.slane %v170_v42, %v5667_v43 }
  0xb7   :  { %1725 = vmatprep.subr.bf16.mxu1 %v4875_v54  ;;  %v181_v46 = vrot.slane %v171_v44, %v5667_v43 }
  0xb8   :  { %1644 = vmatpush1.bf16.msra.mxu0 %v4870_v47 }
  0xb9   :  { %1645 = vmatprep.subr.bf16.mxu0 %v4878_v48 }
  0xba   :  { %1726 = vmatpush1.bf16.msra.mxu1 %v4873_v57 }
  0xbb   :  { %1727 = vmatprep.subr.bf16.mxu1 %v4881_v58  ;;  %v4948_v58 = vld [vmem:[#allocation5 + $0x500] ss:$16 sps:$4 sm:$0xff]  }
  0xbc   :  { %1646 = vmatpush1.bf16.msra.mxu0 %v4876_v51 }
  0xbd   :  { %1647 = vmatprep.subr.bf16.mxu0 %v4884_v52  ;;  %v5676_v52 = vld [vmem:[#allocation8 + $0x8] sm:$0x11] }
  0xbe   :  { %1728 = vmatpush1.bf16.msra.mxu1 %v4879_v61  ;;  %v4956_v61 = vld [vmem:[#allocation5 + $0x524] ss:$16 sps:$4 sm:$0xff]  }
  0xbf   :  { %1729 = vmatprep.subr.bf16.mxu1 %v4887_v62  ;;  %v4959_v62 = vld [vmem:[#allocation5 + $0x52c] ss:$16 sps:$4 sm:$0xff]  }
  0xc0   :  { %1648 = vmatpush1.bf16.msra.mxu0 %v4882_v55 }
  0xc1   :  { %1649 = vmatprep.subr.bf16.mxu0 %v4890_v56  ;;  %v173_v56 = vunpack.c.h.bf16 %v5676_v52 }
  0xc2   :  { %1730 = vmatpush1.bf16.msra.mxu1 %v4885_v1  ;;  %v4957_v1 = vld [vmem:[#allocation5 + $0x528] ss:$16 sps:$4 sm:$0xff]  }
  0xc3   :  { %1731 = vmatprep.subr.bf16.mxu1 %v4893_v2  ;;  %v4962_v2 = vld [vmem:[#allocation5 + $0x544] ss:$16 sps:$4 sm:$0xff]  }
  0xc4   :  { %1650 = vmatpush1.bf16.msra.mxu0 %v4888_v59  ;;  %v4951_v59 = vld [vmem:[#allocation5 + $0x508] ss:$16 sps:$4 sm:$0xff]  }
  0xc5   :  { %1651 = vmatprep.subr.bf16.mxu0 %v4896_v60 }
  0xc6   :  { %1732 = vmatpush1.bf16.msra.mxu1 %v4891_v5 }
  0xc7   :  { %1733 = vmatprep.subr.bf16.mxu1 %v4899_v6 }
  0xc8   :  { %1652 = vmatpush1.bf16.msra.mxu0 %v4894_v63  ;;  %v189_v63 = vrot.slane %v173_v56, %v5667_v43 }
  0xc9   :  { %1653 = vmatprep.subr.bf16.mxu0 %v4902_v0  ;;  %v4954_v0 = vld [vmem:[#allocation5 + $0x520] ss:$16 sps:$4 sm:$0xff]  }
  0xca   :  { %1734 = vmatpush1.bf16.msra.mxu1 %v4897_v9  ;;  %v4963_v9 = vld [vmem:[#allocation5 + $0x548] ss:$16 sps:$4 sm:$0xff]  }
  0xcb   :  { %1735 = vmatprep.subr.bf16.mxu1 %v4905_v10 }
  0xcc   :  { %1654 = vmatpush1.bf16.msra.mxu0 %v4900_v3  ;;  %v4965_v3 = vld [vmem:[#allocation5 + $0x54c] ss:$16 sps:$4 sm:$0xff]  }
  0xcd   :  { %1655 = vmatprep.subr.bf16.mxu0 %v4908_v4 }
  0xce   :  { %1736 = vmatpush1.bf16.msra.mxu1 %v4903_v13 }
  0xcf   :  { %1737 = vmatprep.subr.bf16.mxu1 %v4911_v14 }
  0xd0   :  { %1656 = vmatpush1.bf16.msra.mxu0 %v4906_v7 }
  0xd1   :  { %1657 = vmatprep.subr.bf16.mxu0 %v4914_v8  ;;  %v4960_v8 = vld [vmem:[#allocation5 + $0x540] ss:$16 sps:$4 sm:$0xff]  }
  0xd2   :  { %1738 = vmatpush1.bf16.msra.mxu1 %v4909_v17  ;;  %v4974_v17 = vld [vmem:[#allocation5 + $0x584] ss:$16 sps:$4 sm:$0xff]  }
  0xd3   :  { %1739 = vmatprep.subr.bf16.mxu1 %v4917_v18  ;;  %v4977_v18 = vld [vmem:[#allocation5 + $0x58c] ss:$16 sps:$4 sm:$0xff]  }
  0xd4   :  { %1658 = vmatpush1.bf16.msra.mxu0 %v4912_v11  ;;  %v4968_v11 = vld [vmem:[#allocation5 + $0x564] ss:$16 sps:$4 sm:$0xff]  }
  0xd5   :  { %1659 = vmatprep.subr.bf16.mxu0 %v4920_v12  ;;  %v4971_v12 = vld [vmem:[#allocation5 + $0x56c] ss:$16 sps:$4 sm:$0xff]  }
  0xd6   :  { %1740 = vmatpush1.bf16.msra.mxu1 %v4915_v21  ;;  %v4980_v21 = vld [vmem:[#allocation5 + $0x5a4] ss:$16 sps:$4 sm:$0xff]  }
  0xd7   :  { %1741 = vmatprep.subr.bf16.mxu1 %v4923_v22  ;;  %v4983_v22 = vld [vmem:[#allocation5 + $0x5ac] ss:$16 sps:$4 sm:$0xff]  }
  0xd8   :  { %1660 = vmatpush1.bf16.msra.mxu0 %v4918_v15  ;;  %v4966_v15 = vld [vmem:[#allocation5 + $0x560] ss:$16 sps:$4 sm:$0xff]  }
  0xd9   :  { %1661 = vmatprep.subr.bf16.mxu0 %v4926_v16  ;;  %v4969_v16 = vld [vmem:[#allocation5 + $0x568] ss:$16 sps:$4 sm:$0xff]  }
  0xda   :  { %1742 = vmatpush1.bf16.msra.mxu1 %v4921_v24  ;;  %v4981_v24 = vld [vmem:[#allocation5 + $0x5a8] ss:$16 sps:$4 sm:$0xff]  }
  0xdb   :  { %1743 = vmatprep.subr.bf16.mxu1 %v4929_v25  ;;  %v4986_v25 = vld [vmem:[#allocation5 + $0x5c4] ss:$16 sps:$4 sm:$0xff]  }
  0xdc   :  { %1662 = vmatpush1.bf16.msra.mxu0 %v4924_v19  ;;  %v4972_v19 = vld [vmem:[#allocation5 + $0x580] ss:$16 sps:$4 sm:$0xff]  }
  0xdd   :  { %1663 = vmatprep.subr.bf16.mxu0 %v4932_v20  ;;  %v4975_v20 = vld [vmem:[#allocation5 + $0x588] ss:$16 sps:$4 sm:$0xff]  }
  0xde   :  { %1744 = vmatpush1.bf16.msra.mxu1 %v4927_v26  ;;  %v4989_v26 = vld [vmem:[#allocation5 + $0x5cc] ss:$16 sps:$4 sm:$0xff]  }
  0xdf   :  { %1745 = vmatprep.subr.bf16.mxu1 %v4935_v27  ;;  %v4984_v27 = vld [vmem:[#allocation5 + $0x5c0] ss:$16 sps:$4 sm:$0xff]  }
  0xe0   :  { %1664 = vmatpush1.bf16.msra.mxu0 %v4930_v23  ;;  %v4978_v23 = vld [vmem:[#allocation5 + $0x5a0] ss:$16 sps:$4 sm:$0xff]  }
  0xe1   :  { %1665 = vmatprep.subr.bf16.mxu0 %v4938_v29  ;;  %v4992_v29 = vld [vmem:[#allocation5 + $0x5e4] ss:$16 sps:$4 sm:$0xff]  }
  0xe2   :  { %1746 = vmatpush1.bf16.msra.mxu1 %v4933_v28  ;;  %v4987_v28 = vld [vmem:[#allocation5 + $0x5c8] ss:$16 sps:$4 sm:$0xff]  }
  0xe3   :  { %1747 = vmatprep.subr.bf16.mxu1 %v4941_v30  ;;  %v4995_v30 = vld [vmem:[#allocation5 + $0x5ec] ss:$16 sps:$4 sm:$0xff]  }
  0xe4   :  { %1666 = vmatpush1.bf16.msra.mxu0 %v4936_v31  ;;  %v4990_v31 = vld [vmem:[#allocation5 + $0x5e0] ss:$16 sps:$4 sm:$0xff]  }
  0xe5   :  { %1667 = vmatprep.subr.bf16.mxu0 %v4944_v33  ;;  %v4998_v33 = vld [vmem:[#allocation5 + $0x604] ss:$16 sps:$4 sm:$0xff]  }
  0xe6   :  { %1748 = vmatpush1.bf16.msra.mxu1 %v4939_v32  ;;  %v4993_v32 = vld [vmem:[#allocation5 + $0x5e8] ss:$16 sps:$4 sm:$0xff]  }
  0xe7   :  { %1749 = vmatprep.subr.bf16.mxu1 %v4947_v34  ;;  %v5001_v34 = vld [vmem:[#allocation5 + $0x60c] ss:$16 sps:$4 sm:$0xff]  }
  0xe8   :  { %1668 = vmatpush1.bf16.msra.mxu0 %v4942_v35  ;;  %v4996_v35 = vld [vmem:[#allocation5 + $0x600] ss:$16 sps:$4 sm:$0xff]  }
  0xe9   :  { %1678 = vmatprep.subr.bf16.mxu0 %v4950_v37  ;;  %v5004_v37 = vld [vmem:[#allocation5 + $0x624] ss:$16 sps:$4 sm:$0xff]  }
  0xea   :  { %1750 = vmatpush1.bf16.msra.mxu1 %v4945_v36  ;;  %v4999_v36 = vld [vmem:[#allocation5 + $0x608] ss:$16 sps:$4 sm:$0xff]  }
  0xeb   :  { %1760 = vmatprep.subr.bf16.mxu1 %v4953_v38  ;;  %v5007_v38 = vld [vmem:[#allocation5 + $0x62c] ss:$16 sps:$4 sm:$0xff]  }
 0x17e   :  { %v756_v47 = vpop.f32.mrb[0].mxu0 }
 0x17f   :  { %v4647_v48 = vadd.f32 %v756_v47, %v177_v45  ;;  %v758_v49 = vpop.f32.mrb[1].mxu0  ;;  %v5005_v45 = vld [vmem:[#allocation5 + $0x628] ss:$16 sps:$4 sm:$0xff]   ;;  %v5013_v47 = vld [vmem:[#allocation5 + $0x64c] ss:$16 sps:$4 sm:$0xff]  }
 0x180   :  { %v4648_v50 = vadd.f32 %v758_v49, %v181_v46  ;;  %v760_v51 = vpop.f32.mrb[2].mxu0  ;;  %v5682_v4 = vpop.f32.mrb[0].mxu1  ;;  %v5010_v46 = vld [vmem:[#allocation5 + $0x644] ss:$16 sps:$4 sm:$0xff]   ;;  %v5011_v49 = vld [vmem:[#allocation5 + $0x648] ss:$16 sps:$4 sm:$0xff]  }
 0x181   :  { %v845_v53 = vmax.f32 %v4647_v48, 0.0  ;;  %v761_v54 = vpop.f32.mrb[3].mxu0  ;;  %v840_v5 = vpop.f32.mrb[1].mxu1  ;;  %v5008_v48 = vld [vmem:[#allocation5 + $0x640] ss:$16 sps:$4 sm:$0xff]  }
 0x182   :  { %v846_v55 = vmax.f32 %v4648_v50, 0.0  ;;  %v4650_v6 = vadd.f32 %v840_v5, %v189_v63  ;;  %v842_v7 = vpop.f32.mrb[2].mxu1  ;;  %v5016_v50 = vld [vmem:[#allocation5 + $0x664] ss:$16 sps:$4 sm:$0xff]   ;;  %v5019_v51 = vld [vmem:[#allocation5 + $0x66c] ss:$16 sps:$4 sm:$0xff]  }
 0x183   :  { %v849_v60 = vpack.c.bf16 %v845_v53, %v845_v53  ;;  %v843_v10 = vpop.f32.mrb[3].mxu1  ;;  %v5014_v53 = vld [vmem:[#allocation5 + $0x660] ss:$16 sps:$4 sm:$0xff]   ;;  %v5017_v54 = vld [vmem:[#allocation5 + $0x668] ss:$16 sps:$4 sm:$0xff]  }
 0x184   :  { %v850_v57 = vpack.c.bf16 %v846_v55, %v846_v55  ;;  %v848_v13 = vmax.f32 %v4650_v6, 0.0  ;;  %v5022_v55 = vld [vmem:[#allocation5 + $0x684] ss:$16 sps:$4 sm:$0xff]   ;;  %v5026_v63 = vld [vmem:[#allocation5 + $0x6a0] ss:$16 sps:$4 sm:$0xff]  }
 0x185   :  { %v5032_v5 = vld [vmem:[#allocation5 + $0x6c0] ss:$16 sps:$4 sm:$0xff]   ;;  %v5035_v6 = vld [vmem:[#allocation5 + $0x6c8] ss:$16 sps:$4 sm:$0xff]  }
 0x186   :  { %1669 = vmatprep.mubr.bf16.mxu0 %v850_v57  ;;  %1751 = vmatprep.mubr.bf16.mxu1 %v850_v57  ;;  %v852_v14 = vpack.c.bf16 %v848_v13, %v848_v13  ;;  %v5025_v57 = vld [vmem:[#allocation5 + $0x68c] ss:$16 sps:$4 sm:$0xff]   ;;  %v5038_v10 = vld [vmem:[#allocation5 + $0x6e0] ss:$16 sps:$4 sm:$0xff]  }
 0x187   :  { %1670 = vmatmul.mubr.bf16.vlgmr.msra.gmra.mrb[4].mxu0 %v849_v60  ;;  %1752 = vmatmul.mubr.bf16.vlgmr.msra.gmra.mrb[4].mxu1 %v849_v60  ;;  %v172_v60 = vunpack.c.l.bf16 %v5676_v52  ;;  %v5049_v13 = vld [vmem:[#allocation5 + $0x70c] ss:$16 sps:$4 sm:$0xff]  }
 0x188   :  { %1679 = vmatpush1.bf16.msra.mxu0 %v4948_v58  ;;  %1761 = vmatpush1.bf16.msra.mxu1 %v4951_v59  ;;  %v5020_v58 = vld [vmem:[#allocation5 + $0x680] ss:$16 sps:$4 sm:$0xff]   ;;  %v5023_v59 = vld [vmem:[#allocation5 + $0x688] ss:$16 sps:$4 sm:$0xff]  }
 0x189   :  { %1680 = vmatprep.subr.bf16.mxu0 %v4956_v61  ;;  %1762 = vmatprep.subr.bf16.mxu1 %v4959_v62  ;;  %v5028_v61 = vld [vmem:[#allocation5 + $0x6a4] ss:$16 sps:$4 sm:$0xff]   ;;  %v5031_v62 = vld [vmem:[#allocation5 + $0x6ac] ss:$16 sps:$4 sm:$0xff]  }
 0x18a   :  { %1710 = vmatprep.mubr.bf16.mxu0 %v852_v14  ;;  %1792 = vmatprep.mubr.bf16.mxu1 %v852_v14  ;;  %v5044_v14 = vld [vmem:[#allocation5 + $0x700] ss:$16 sps:$4 sm:$0xff]  }
 0x18c   :  { %1681 = vmatpush1.bf16.msra.mxu0 %v4954_v0  ;;  %1763 = vmatpush1.bf16.msra.mxu1 %v4957_v1  ;;  %v5029_v0 = vld [vmem:[#allocation5 + $0x6a8] ss:$16 sps:$4 sm:$0xff]   ;;  %v185_v1 = vrot.slane %v172_v60, %v5667_v43  ;;  %v5046_v43 = vld [vmem:[#allocation5 + $0x704] ss:$16 sps:$4 sm:$0xff]  }
 0x18d   :  { %1682 = vmatprep.subr.bf16.mxu0 %v4962_v2  ;;  %1764 = vmatprep.subr.bf16.mxu1 %v4965_v3  ;;  %v5034_v2 = vld [vmem:[#allocation5 + $0x6c4] ss:$16 sps:$4 sm:$0xff]   ;;  %v5037_v3 = vld [vmem:[#allocation5 + $0x6cc] ss:$16 sps:$4 sm:$0xff]  }
 0x18e   :  { %v4649_v7 = vadd.f32 %v5682_v4, %v185_v1  ;;  %v5052_v4 = vld [vmem:[#allocation5 + $0x724] ss:$16 sps:$4 sm:$0xff]   ;;  %v5115_v1 = vld [vmem:[#allocation5 + $0x86c] ss:$16 sps:$4 sm:$0xff]  }
 0x190   :  { %1683 = vmatpush1.bf16.msra.mxu0 %v4960_v8  ;;  %1765 = vmatpush1.bf16.msra.mxu1 %v4963_v9  ;;  %v5040_v8 = vld [vmem:[#allocation5 + $0x6e4] ss:$16 sps:$4 sm:$0xff]   ;;  %v5043_v9 = vld [vmem:[#allocation5 + $0x6ec] ss:$16 sps:$4 sm:$0xff]  }
 0x191   :  { %1684 = vmatprep.subr.bf16.mxu0 %v4968_v11  ;;  %1766 = vmatprep.subr.bf16.mxu1 %v4971_v12  ;;  %v5041_v11 = vld [vmem:[#allocation5 + $0x6e8] ss:$16 sps:$4 sm:$0xff]   ;;  %v847_v12 = vmax.f32 %v4649_v7, 0.0  ;;  %v5116_v7 = vld [vmem:[#allocation5 + $0x880] ss:$16 sps:$4 sm:$0xff]  }
 0x194   :  { %1685 = vmatpush1.bf16.msra.mxu0 %v4966_v15  ;;  %1767 = vmatpush1.bf16.msra.mxu1 %v4969_v16  ;;  %v5047_v15 = vld [vmem:[#allocation5 + $0x708] ss:$16 sps:$4 sm:$0xff]   ;;  %v851_v16 = vpack.c.bf16 %v847_v12, %v847_v12 }
 0x195   :  { %1686 = vmatprep.subr.bf16.mxu0 %v4974_v17  ;;  %1768 = vmatprep.subr.bf16.mxu1 %v4977_v18  ;;  %v5055_v17 = vld [vmem:[#allocation5 + $0x72c] ss:$16 sps:$4 sm:$0xff]   ;;  %v5050_v18 = vld [vmem:[#allocation5 + $0x720] ss:$16 sps:$4 sm:$0xff]   ;;  %v5125_v12 = vld [vmem:[#allocation5 + $0x8a8] ss:$16 sps:$4 sm:$0xff]  }
 0x198   :  { %1687 = vmatpush1.bf16.msra.mxu0 %v4972_v19  ;;  %1769 = vmatpush1.bf16.msra.mxu1 %v4975_v20  ;;  %v5053_v19 = vld [vmem:[#allocation5 + $0x728] ss:$16 sps:$4 sm:$0xff]   ;;  %v5058_v20 = vld [vmem:[#allocation5 + $0x744] ss:$16 sps:$4 sm:$0xff]  }
 0x199   :  { %1688 = vmatprep.subr.bf16.mxu0 %v4980_v21  ;;  %1770 = vmatprep.subr.bf16.mxu1 %v4983_v22  ;;  %v5061_v21 = vld [vmem:[#allocation5 + $0x74c] ss:$16 sps:$4 sm:$0xff]   ;;  %v5056_v22 = vld [vmem:[#allocation5 + $0x740] ss:$16 sps:$4 sm:$0xff]  }
 0x19c   :  { %1689 = vmatpush1.bf16.msra.mxu0 %v4978_v23  ;;  %1771 = vmatpush1.bf16.msra.mxu1 %v4981_v24  ;;  %v5059_v23 = vld [vmem:[#allocation5 + $0x748] ss:$16 sps:$4 sm:$0xff]   ;;  %v5064_v24 = vld [vmem:[#allocation5 + $0x764] ss:$16 sps:$4 sm:$0xff]  }
 0x19d   :  { %1690 = vmatprep.subr.bf16.mxu0 %v4986_v25  ;;  %1772 = vmatprep.subr.bf16.mxu1 %v4989_v26  ;;  %v5067_v25 = vld [vmem:[#allocation5 + $0x76c] ss:$16 sps:$4 sm:$0xff]   ;;  %v5062_v26 = vld [vmem:[#allocation5 + $0x760] ss:$16 sps:$4 sm:$0xff]  }
 0x1a0   :  { %1691 = vmatpush1.bf16.msra.mxu0 %v4984_v27  ;;  %1773 = vmatpush1.bf16.msra.mxu1 %v4987_v28  ;;  %v5065_v27 = vld [vmem:[#allocation5 + $0x768] ss:$16 sps:$4 sm:$0xff]   ;;  %v5070_v28 = vld [vmem:[#allocation5 + $0x784] ss:$16 sps:$4 sm:$0xff]  }
 0x1a1   :  { %1692 = vmatprep.subr.bf16.mxu0 %v4992_v29  ;;  %1774 = vmatprep.subr.bf16.mxu1 %v4995_v30  ;;  %v5073_v29 = vld [vmem:[#allocation5 + $0x78c] ss:$16 sps:$4 sm:$0xff]   ;;  %v5068_v30 = vld [vmem:[#allocation5 + $0x780] ss:$16 sps:$4 sm:$0xff]  }
 0x1a4   :  { %1693 = vmatpush1.bf16.msra.mxu0 %v4990_v31  ;;  %1775 = vmatpush1.bf16.msra.mxu1 %v4993_v32  ;;  %v5071_v31 = vld [vmem:[#allocation5 + $0x788] ss:$16 sps:$4 sm:$0xff]   ;;  %v5076_v32 = vld [vmem:[#allocation5 + $0x7a4] ss:$16 sps:$4 sm:$0xff]  }
 0x1a5   :  { %1694 = vmatprep.subr.bf16.mxu0 %v4998_v33  ;;  %1776 = vmatprep.subr.bf16.mxu1 %v5001_v34  ;;  %v5079_v33 = vld [vmem:[#allocation5 + $0x7ac] ss:$16 sps:$4 sm:$0xff]   ;;  %v5074_v34 = vld [vmem:[#allocation5 + $0x7a0] ss:$16 sps:$4 sm:$0xff]  }
 0x1a8   :  { %1695 = vmatpush1.bf16.msra.mxu0 %v4996_v35  ;;  %1777 = vmatpush1.bf16.msra.mxu1 %v4999_v36  ;;  %v5077_v35 = vld [vmem:[#allocation5 + $0x7a8] ss:$16 sps:$4 sm:$0xff]   ;;  %v5082_v36 = vld [vmem:[#allocation5 + $0x7c4] ss:$16 sps:$4 sm:$0xff]  }
 0x1a9   :  { %1696 = vmatprep.subr.bf16.mxu0 %v5004_v37  ;;  %1778 = vmatprep.subr.bf16.mxu1 %v5007_v38  ;;  %v5085_v37 = vld [vmem:[#allocation5 + $0x7cc] ss:$16 sps:$4 sm:$0xff]   ;;  %v5080_v38 = vld [vmem:[#allocation5 + $0x7c0] ss:$16 sps:$4 sm:$0xff]  }
 0x1ac   :  { %1697 = vmatpush1.bf16.msra.mxu0 %v5002_v39  ;;  %1779 = vmatpush1.bf16.msra.mxu1 %v5005_v45  ;;  %v5083_v39 = vld [vmem:[#allocation5 + $0x7c8] ss:$16 sps:$4 sm:$0xff]   ;;  %v5088_v45 = vld [vmem:[#allocation5 + $0x7e4] ss:$16 sps:$4 sm:$0xff]  }
 0x1ad   :  { %1698 = vmatprep.subr.bf16.mxu0 %v5010_v46  ;;  %1780 = vmatprep.subr.bf16.mxu1 %v5013_v47  ;;  %v5091_v46 = vld [vmem:[#allocation5 + $0x7ec] ss:$16 sps:$4 sm:$0xff]   ;;  %v5086_v47 = vld [vmem:[#allocation5 + $0x7e0] ss:$16 sps:$4 sm:$0xff]  }
 0x1b0   :  { %1699 = vmatpush1.bf16.msra.mxu0 %v5008_v48  ;;  %1781 = vmatpush1.bf16.msra.mxu1 %v5011_v49  ;;  %v5089_v48 = vld [vmem:[#allocation5 + $0x7e8] ss:$16 sps:$4 sm:$0xff]   ;;  %v5094_v49 = vld [vmem:[#allocation5 + $0x804] ss:$16 sps:$4 sm:$0xff]  }
 0x1b1   :  { %1700 = vmatprep.subr.bf16.mxu0 %v5016_v50  ;;  %1782 = vmatprep.subr.bf16.mxu1 %v5019_v51  ;;  %v5097_v50 = vld [vmem:[#allocation5 + $0x80c] ss:$16 sps:$4 sm:$0xff]   ;;  %v5092_v51 = vld [vmem:[#allocation5 + $0x800] ss:$16 sps:$4 sm:$0xff]  }
 0x1b4   :  { %1701 = vmatpush1.bf16.msra.mxu0 %v5014_v53  ;;  %1783 = vmatpush1.bf16.msra.mxu1 %v5017_v54  ;;  %v5095_v53 = vld [vmem:[#allocation5 + $0x808] ss:$16 sps:$4 sm:$0xff]   ;;  %v5100_v54 = vld [vmem:[#allocation5 + $0x824] ss:$16 sps:$4 sm:$0xff]  }
 0x1b5   :  { %1702 = vmatprep.subr.bf16.mxu0 %v5022_v55  ;;  %1784 = vmatprep.subr.bf16.mxu1 %v5025_v57  ;;  %v5103_v55 = vld [vmem:[#allocation5 + $0x82c] ss:$16 sps:$4 sm:$0xff]   ;;  %v5098_v57 = vld [vmem:[#allocation5 + $0x820] ss:$16 sps:$4 sm:$0xff]  }
 0x1b8   :  { %1703 = vmatpush1.bf16.msra.mxu0 %v5020_v58  ;;  %1785 = vmatpush1.bf16.msra.mxu1 %v5023_v59  ;;  %v5101_v58 = vld [vmem:[#allocation5 + $0x828] ss:$16 sps:$4 sm:$0xff]   ;;  %v5106_v59 = vld [vmem:[#allocation5 + $0x844] ss:$16 sps:$4 sm:$0xff]  }
 0x1b9   :  { %1704 = vmatprep.subr.bf16.mxu0 %v5028_v61  ;;  %1786 = vmatprep.subr.bf16.mxu1 %v5031_v62  ;;  %v5109_v61 = vld [vmem:[#allocation5 + $0x84c] ss:$16 sps:$4 sm:$0xff]   ;;  %v5104_v62 = vld [vmem:[#allocation5 + $0x840] ss:$16 sps:$4 sm:$0xff]  }
 0x1bc   :  { %1705 = vmatpush1.bf16.msra.mxu0 %v5026_v63  ;;  %1787 = vmatpush1.bf16.msra.mxu1 %v5029_v0  ;;  %v5107_v63 = vld [vmem:[#allocation5 + $0x848] ss:$16 sps:$4 sm:$0xff]   ;;  %v5112_v0 = vld [vmem:[#allocation5 + $0x864] ss:$16 sps:$4 sm:$0xff]  }
 0x1bd   :  { %1706 = vmatprep.subr.bf16.mxu0 %v5034_v2  ;;  %1788 = vmatprep.subr.bf16.mxu1 %v5037_v3  ;;  %v5110_v2 = vld [vmem:[#allocation5 + $0x860] ss:$16 sps:$4 sm:$0xff]   ;;  %v5113_v3 = vld [vmem:[#allocation5 + $0x868] ss:$16 sps:$4 sm:$0xff]  }
 0x1c0   :  { %1707 = vmatpush1.bf16.msra.mxu0 %v5032_v5  ;;  %1789 = vmatpush1.bf16.msra.mxu1 %v5035_v6  ;;  %v5118_v5 = vld [vmem:[#allocation5 + $0x884] ss:$16 sps:$4 sm:$0xff]   ;;  %v5121_v6 = vld [vmem:[#allocation5 + $0x88c] ss:$16 sps:$4 sm:$0xff]  }
 0x1c1   :  { %1708 = vmatprep.subr.bf16.mxu0 %v5040_v8  ;;  %1790 = vmatprep.subr.bf16.mxu1 %v5043_v9  ;;  %v5119_v8 = vld [vmem:[#allocation5 + $0x888] ss:$16 sps:$4 sm:$0xff]   ;;  %v5124_v9 = vld [vmem:[#allocation5 + $0x8a4] ss:$16 sps:$4 sm:$0xff]  }
 0x1c4   :  { %1709 = vmatpush1.bf16.msra.mxu0 %v5038_v10  ;;  %1791 = vmatpush1.bf16.msra.mxu1 %v5041_v11  ;;  %v5127_v10 = vld [vmem:[#allocation5 + $0x8ac] ss:$16 sps:$4 sm:$0xff]   ;;  %v5122_v11 = vld [vmem:[#allocation5 + $0x8a0] ss:$16 sps:$4 sm:$0xff]  }
 0x1c5   :  { %2599 = vmatprep.subr.bf16.mxu0 %v5046_v43  ;;  %2681 = vmatprep.subr.bf16.mxu1 %v5049_v13  ;;  %v5130_v43 = vld [vmem:[#allocation5 + $0x8c4] ss:$16 sps:$4 sm:$0xff]   ;;  %v5133_v13 = vld [vmem:[#allocation5 + $0x8cc] ss:$16 sps:$4 sm:$0xff]  }
 0x1c7   :  { %1711 = vmatmul.mubr.bf16.vlgmr.msra.gmra.mrb[4].mxu0 %v851_v16  ;;  %1793 = vmatmul.mubr.bf16.vlgmr.msra.gmra.mrb[4].mxu1 %v851_v16  ;;  %v5136_v16 = vld [vmem:[#allocation5 + $0x8e4] ss:$16 sps:$4 sm:$0xff]  }
 0x1c8   :  { %2600 = vmatpush1.bf16.msra.mxu0 %v5044_v14  ;;  %2682 = vmatpush1.bf16.msra.mxu1 %v5047_v15  ;;  %v5128_v14 = vld [vmem:[#allocation5 + $0x8c0] ss:$16 sps:$4 sm:$0xff]   ;;  %v5131_v15 = vld [vmem:[#allocation5 + $0x8c8] ss:$16 sps:$4 sm:$0xff]  }
 0x1c9   :  { %2601 = vmatprep.subr.bf16.mxu0 %v5052_v4  ;;  %2683 = vmatprep.subr.bf16.mxu1 %v5055_v17  ;;  %v5139_v4 = vld [vmem:[#allocation5 + $0x8ec] ss:$16 sps:$4 sm:$0xff]   ;;  %v5134_v17 = vld [vmem:[#allocation5 + $0x8e0] ss:$16 sps:$4 sm:$0xff]  }
 0x1cc   :  { %2602 = vmatpush1.bf16.msra.mxu0 %v5050_v18  ;;  %2684 = vmatpush1.bf16.msra.mxu1 %v5053_v19  ;;  %v5137_v18 = vld [vmem:[#allocation5 + $0x8e8] ss:$16 sps:$4 sm:$0xff]   ;;  %v5142_v19 = vld [vmem:[#allocation5 + $0x904] ss:$16 sps:$4 sm:$0xff]  }
 0x1cd   :  { %2603 = vmatprep.subr.bf16.mxu0 %v5058_v20  ;;  %2685 = vmatprep.subr.bf16.mxu1 %v5061_v21  ;;  %v5145_v20 = vld [vmem:[#allocation5 + $0x90c] ss:$16 sps:$4 sm:$0xff]   ;;  %v5690_v21 = vsub.s32 1, %v5661_v40 }
 0x1d0   :  { %2604 = vmatpush1.bf16.msra.mxu0 %v5056_v22  ;;  %2686 = vmatpush1.bf16.msra.mxu1 %v5059_v23  ;;  %v984_v22 = vrot.slane %v170_v42, %v5690_v21  ;;  %v988_v23 = vrot.slane %v171_v44, %v5690_v21 }
 0x1d1   :  { %2605 = vmatprep.subr.bf16.mxu0 %v5064_v24  ;;  %2687 = vmatprep.subr.bf16.mxu1 %v5067_v25  ;;  %v996_v24 = vrot.slane %v173_v56, %v5690_v21  ;;  %v5148_v56 = vld [vmem:[#allocation5 + $0x924] ss:$16 sps:$4 sm:$0xff]  }
 0x1d4   :  { %2606 = vmatpush1.bf16.msra.mxu0 %v5062_v26  ;;  %2688 = vmatpush1.bf16.msra.mxu1 %v5065_v27 }
 0x1d5   :  { %2607 = vmatprep.subr.bf16.mxu0 %v5070_v28  ;;  %2689 = vmatprep.subr.bf16.mxu1 %v5073_v29 }
 0x1d8   :  { %2608 = vmatpush1.bf16.msra.mxu0 %v5068_v30  ;;  %2690 = vmatpush1.bf16.msra.mxu1 %v5071_v31 }
 0x1d9   :  { %2609 = vmatprep.subr.bf16.mxu0 %v5076_v32  ;;  %2691 = vmatprep.subr.bf16.mxu1 %v5079_v33 }
 0x1dc   :  { %2610 = vmatpush1.bf16.msra.mxu0 %v5074_v34  ;;  %2692 = vmatpush1.bf16.msra.mxu1 %v5077_v35 }
 0x1dd   :  { %2611 = vmatprep.subr.bf16.mxu0 %v5082_v36  ;;  %2693 = vmatprep.subr.bf16.mxu1 %v5085_v37  ;;  %v5140_v37 = vld [vmem:[#allocation5 + $0x900] ss:$16 sps:$4 sm:$0xff]  }
 0x1e0   :  { %2612 = vmatpush1.bf16.msra.mxu0 %v5080_v38  ;;  %2694 = vmatpush1.bf16.msra.mxu1 %v5083_v39  ;;  %v5143_v38 = vld [vmem:[#allocation5 + $0x908] ss:$16 sps:$4 sm:$0xff]  }
 0x1e1   :  { %2613 = vmatprep.subr.bf16.mxu0 %v5088_v45  ;;  %2695 = vmatprep.subr.bf16.mxu1 %v5091_v46  ;;  %v5151_v45 = vld [vmem:[#allocation5 + $0x92c] ss:$16 sps:$4 sm:$0xff]  }
 0x1e4   :  { %2614 = vmatpush1.bf16.msra.mxu0 %v5086_v47  ;;  %2696 = vmatpush1.bf16.msra.mxu1 %v5089_v48  ;;  %v5146_v47 = vld [vmem:[#allocation5 + $0x920] ss:$16 sps:$4 sm:$0xff]   ;;  %v5149_v48 = vld [vmem:[#allocation5 + $0x928] ss:$16 sps:$4 sm:$0xff]  }
 0x1e5   :  { %2615 = vmatprep.subr.bf16.mxu0 %v5094_v49  ;;  %2697 = vmatprep.subr.bf16.mxu1 %v5097_v50  ;;  %v5154_v49 = vld [vmem:[#allocation5 + $0x944] ss:$16 sps:$4 sm:$0xff]   ;;  %v5157_v50 = vld [vmem:[#allocation5 + $0x94c] ss:$16 sps:$4 sm:$0xff]  }
 0x1e8   :  { %2616 = vmatpush1.bf16.msra.mxu0 %v5092_v51  ;;  %2698 = vmatpush1.bf16.msra.mxu1 %v5095_v53  ;;  %v5152_v51 = vld [vmem:[#allocation5 + $0x940] ss:$16 sps:$4 sm:$0xff]   ;;  %v5155_v53 = vld [vmem:[#allocation5 + $0x948] ss:$16 sps:$4 sm:$0xff]  }
 0x1e9   :  { %2617 = vmatprep.subr.bf16.mxu0 %v5100_v54  ;;  %2699 = vmatprep.subr.bf16.mxu1 %v5103_v55  ;;  %v5160_v54 = vld [vmem:[#allocation5 + $0x964] ss:$16 sps:$4 sm:$0xff]   ;;  %v5163_v55 = vld [vmem:[#allocation5 + $0x96c] ss:$16 sps:$4 sm:$0xff]  }
 0x1ec   :  { %2618 = vmatpush1.bf16.msra.mxu0 %v5098_v57  ;;  %2700 = vmatpush1.bf16.msra.mxu1 %v5101_v58  ;;  %v5158_v57 = vld [vmem:[#allocation5 + $0x960] ss:$16 sps:$4 sm:$0xff]   ;;  %v5161_v58 = vld [vmem:[#allocation5 + $0x968] ss:$16 sps:$4 sm:$0xff]  }
 0x1ed   :  { %2619 = vmatprep.subr.bf16.mxu0 %v5106_v59  ;;  %2701 = vmatprep.subr.bf16.mxu1 %v5109_v61  ;;  %v5166_v59 = vld [vmem:[#allocation5 + $0x984] ss:$16 sps:$4 sm:$0xff]   ;;  %v5169_v61 = vld [vmem:[#allocation5 + $0x98c] ss:$16 sps:$4 sm:$0xff]  }
 0x1f0   :  { %2620 = vmatpush1.bf16.msra.mxu0 %v5104_v62  ;;  %2702 = vmatpush1.bf16.msra.mxu1 %v5107_v63  ;;  %v5164_v62 = vld [vmem:[#allocation5 + $0x980] ss:$16 sps:$4 sm:$0xff]   ;;  %v5167_v63 = vld [vmem:[#allocation5 + $0x988] ss:$16 sps:$4 sm:$0xff]  }
 0x1f1   :  { %2621 = vmatprep.subr.bf16.mxu0 %v5112_v0  ;;  %2703 = vmatprep.subr.bf16.mxu1 %v5115_v1  ;;  %v5172_v0 = vld [vmem:[#allocation5 + $0x9a4] ss:$16 sps:$4 sm:$0xff]   ;;  %v5175_v1 = vld [vmem:[#allocation5 + $0x9ac] ss:$16 sps:$4 sm:$0xff]  }
 0x1f4   :  { %2622 = vmatpush1.bf16.msra.mxu0 %v5110_v2  ;;  %2704 = vmatpush1.bf16.msra.mxu1 %v5113_v3  ;;  %v5170_v2 = vld [vmem:[#allocation5 + $0x9a0] ss:$16 sps:$4 sm:$0xff]   ;;  %v5173_v3 = vld [vmem:[#allocation5 + $0x9a8] ss:$16 sps:$4 sm:$0xff]  }
 0x1f5   :  { %2623 = vmatprep.subr.bf16.mxu0 %v5118_v5  ;;  %2705 = vmatprep.subr.bf16.mxu1 %v5121_v6  ;;  %v5178_v5 = vld [vmem:[#allocation5 + $0x9c4] ss:$16 sps:$4 sm:$0xff]   ;;  %v5181_v6 = vld [vmem:[#allocation5 + $0x9cc] ss:$16 sps:$4 sm:$0xff]  }
 0x1f8   :  { %2624 = vmatpush1.bf16.msra.mxu0 %v5116_v7  ;;  %2706 = vmatpush1.bf16.msra.mxu1 %v5119_v8  ;;  %v5176_v7 = vld [vmem:[#allocation5 + $0x9c0] ss:$16 sps:$4 sm:$0xff]   ;;  %v5179_v8 = vld [vmem:[#allocation5 + $0x9c8] ss:$16 sps:$4 sm:$0xff]  }
 0x1f9   :  { %2625 = vmatprep.subr.bf16.mxu0 %v5124_v9  ;;  %2707 = vmatprep.subr.bf16.mxu1 %v5127_v10  ;;  %v5184_v9 = vld [vmem:[#allocation5 + $0x9e4] ss:$16 sps:$4 sm:$0xff]   ;;  %v5187_v10 = vld [vmem:[#allocation5 + $0x9ec] ss:$16 sps:$4 sm:$0xff]  }
 0x1fc   :  { %2626 = vmatpush1.bf16.msra.mxu0 %v5122_v11  ;;  %2708 = vmatpush1.bf16.msra.mxu1 %v5125_v12  ;;  %v5182_v11 = vld [vmem:[#allocation5 + $0x9e0] ss:$16 sps:$4 sm:$0xff]   ;;  %v5185_v12 = vld [vmem:[#allocation5 + $0x9e8] ss:$16 sps:$4 sm:$0xff]  }
 0x1fd   :  { %2627 = vmatprep.subr.bf16.mxu0 %v5130_v43  ;;  %2709 = vmatprep.subr.bf16.mxu1 %v5133_v13  ;;  %v5190_v43 = vld [vmem:[#allocation5 + $0xa04] ss:$16 sps:$4 sm:$0xff]   ;;  %v5193_v13 = vld [vmem:[#allocation5 + $0xa0c] ss:$16 sps:$4 sm:$0xff]  }
 0x200   :  { %2628 = vmatpush1.bf16.msra.mxu0 %v5128_v14  ;;  %2710 = vmatpush1.bf16.msra.mxu1 %v5131_v15  ;;  %v5188_v14 = vld [vmem:[#allocation5 + $0xa00] ss:$16 sps:$4 sm:$0xff]   ;;  %v5191_v15 = vld [vmem:[#allocation5 + $0xa08] ss:$16 sps:$4 sm:$0xff]  }
 0x201   :  { %2629 = vmatprep.subr.bf16.mxu0 %v5136_v16  ;;  %2711 = vmatprep.subr.bf16.mxu1 %v5139_v4  ;;  %v5196_v16 = vld [vmem:[#allocation5 + $0xa24] ss:$16 sps:$4 sm:$0xff]   ;;  %v5199_v4 = vld [vmem:[#allocation5 + $0xa2c] ss:$16 sps:$4 sm:$0xff]  }
 0x204   :  { %2630 = vmatpush1.bf16.msra.mxu0 %v5134_v17  ;;  %2712 = vmatpush1.bf16.msra.mxu1 %v5137_v18  ;;  %v5194_v17 = vld [vmem:[#allocation5 + $0xa20] ss:$16 sps:$4 sm:$0xff]   ;;  %v5197_v18 = vld [vmem:[#allocation5 + $0xa28] ss:$16 sps:$4 sm:$0xff]  }
 0x205   :  { %2640 = vmatprep.subr.bf16.mxu0 %v5142_v19  ;;  %2722 = vmatprep.subr.bf16.mxu1 %v5145_v20  ;;  %v5202_v19 = vld [vmem:[#allocation5 + $0xa44] ss:$16 sps:$4 sm:$0xff]   ;;  %v5205_v20 = vld [vmem:[#allocation5 + $0xa4c] ss:$16 sps:$4 sm:$0xff]  }
 0x29a   :  { %v1712_v25 = vpop.f32.mrb[4].mxu0  ;;  %v5701_v26 = vpop.f32.mrb[4].mxu1 }
 0x29b   :  { %v4651_v27 = vadd.f32 %v1712_v25, %v984_v22  ;;  %v1714_v28 = vpop.f32.mrb[5].mxu0  ;;  %v1796_v29 = vpop.f32.mrb[5].mxu1  ;;  %v5200_v22 = vld [vmem:[#allocation5 + $0xa40] ss:$16 sps:$4 sm:$0xff]   ;;  %v5211_v25 = vld [vmem:[#allocation5 + $0xa6c] ss:$16 sps:$4 sm:$0xff]  }
 0x29c   :  { %v4652_v30 = vadd.f32 %v1714_v28, %v988_v23  ;;  %v4654_v31 = vadd.f32 %v1796_v29, %v996_v24  ;;  %v1716_v32 = vpop.f32.mrb[6].mxu0  ;;  %v1798_v33 = vpop.f32.mrb[6].mxu1  ;;  %v5203_v23 = vld [vmem:[#allocation5 + $0xa48] ss:$16 sps:$4 sm:$0xff]   ;;  %v5208_v24 = vld [vmem:[#allocation5 + $0xa64] ss:$16 sps:$4 sm:$0xff]  }
 0x29d   :  { %v1801_v34 = vmax.f32 %v4651_v27, 0.0  ;;  %v1717_v42 = vpop.f32.mrb[7].mxu0  ;;  %v1799_v35 = vpop.f32.mrb[7].mxu1  ;;  %v5206_v27 = vld [vmem:[#allocation5 + $0xa60] ss:$16 sps:$4 sm:$0xff]  }
 0x29e   :  { %v1802_v36 = vmax.f32 %v4652_v30, 0.0  ;;  %v1804_v41 = vmax.f32 %v4654_v31, 0.0  ;;  %v5209_v28 = vld [vmem:[#allocation5 + $0xa68] ss:$16 sps:$4 sm:$0xff]   ;;  %v5214_v29 = vld [vmem:[#allocation5 + $0xa84] ss:$16 sps:$4 sm:$0xff]  }
 0x29f   :  { %v1805_v39 = vpack.c.bf16 %v1801_v34, %v1801_v34  ;;  %v5217_v30 = vld [vmem:[#allocation5 + $0xa8c] ss:$16 sps:$4 sm:$0xff]   ;;  %v5212_v31 = vld [vmem:[#allocation5 + $0xa80] ss:$16 sps:$4 sm:$0xff]   ;;  %v5215_v32 = vld [vmem:[#allocation5 + $0xa88] ss:$16 sps:$4 sm:$0xff]  }
 0x2a0   :  { %v1806_v44 = vpack.c.bf16 %v1802_v36, %v1802_v36  ;;  %v1808_v46 = vpack.c.bf16 %v1804_v41, %v1804_v41  ;;  %v5220_v33 = vld [vmem:[#allocation5 + $0xaa4] ss:$16 sps:$4 sm:$0xff]   ;;  %v5223_v34 = vld [vmem:[#allocation5 + $0xaac] ss:$16 sps:$4 sm:$0xff]   ;;  %v5218_v42 = vld [vmem:[#allocation5 + $0xaa0] ss:$16 sps:$4 sm:$0xff]   ;;  %v992_v36 = vrot.slane %v172_v60, %v5690_v21 }
 0x2a1   :  { %v5221_v35 = vld [vmem:[#allocation5 + $0xaa8] ss:$16 sps:$4 sm:$0xff]   ;;  %v5226_v41 = vld [vmem:[#allocation5 + $0xac4] ss:$16 sps:$4 sm:$0xff]   ;;  %v5241_v21 = vld [vmem:[#allocation5 + $0xb0c] ss:$16 sps:$4 sm:$0xff]  }
 0x2a2   :  { %2631 = vmatprep.mubr.bf16.mxu0 %v1806_v44  ;;  %2713 = vmatprep.mubr.bf16.mxu1 %v1806_v44  ;;  %v5229_v44 = vld [vmem:[#allocation5 + $0xacc] ss:$16 sps:$4 sm:$0xff]   ;;  %v5238_v60 = vld [vmem:[#allocation5 + $0xb04] ss:$16 sps:$4 sm:$0xff]  }
 0x2a3   :  { %2632 = vmatmul.mubr.bf16.vlgmr.msra.gmra.mrb[8].mxu0 %v1805_v39  ;;  %2714 = vmatmul.mubr.bf16.vlgmr.msra.gmra.mrb[8].mxu1 %v1805_v39  ;;  %v4653_v39 = vadd.f32 %v5701_v26, %v992_v36  ;;  %v5244_v26 = vld [vmem:[#allocation5 + $0xb24] ss:$16 sps:$4 sm:$0xff]   ;;  %v5311_v36 = vld [vmem:[#allocation5 + $0xc88] ss:$16 sps:$4 sm:$0xff]  }
 0x2a4   :  { %2641 = vmatpush1.bf16.msra.mxu0 %v5140_v37  ;;  %2723 = vmatpush1.bf16.msra.mxu1 %v5143_v38  ;;  %v5224_v37 = vld [vmem:[#allocation5 + $0xac0] ss:$16 sps:$4 sm:$0xff]   ;;  %v5227_v38 = vld [vmem:[#allocation5 + $0xac8] ss:$16 sps:$4 sm:$0xff]  }
 0x2a5   :  { %2672 = vmatprep.mubr.bf16.mxu0 %v1808_v46  ;;  %2754 = vmatprep.mubr.bf16.mxu1 %v1808_v46  ;;  %v5230_v46 = vld [vmem:[#allocation5 + $0xae0] ss:$16 sps:$4 sm:$0xff]   ;;  %v1803_v52 = vmax.f32 %v4653_v39, 0.0  ;;  %v5322_v39 = vld [vmem:[#allocation5 + $0xcc4] ss:$16 sps:$4 sm:$0xff]  }
 0x2a6   :  { %2642 = vmatprep.subr.bf16.mxu0 %v5148_v56  ;;  %2724 = vmatprep.subr.bf16.mxu1 %v5151_v45  ;;  %v5232_v56 = vld [vmem:[#allocation5 + $0xae4] ss:$16 sps:$4 sm:$0xff]   ;;  %v5235_v45 = vld [vmem:[#allocation5 + $0xaec] ss:$16 sps:$4 sm:$0xff]  }
 0x2a8   :  { %2643 = vmatpush1.bf16.msra.mxu0 %v5146_v47  ;;  %2725 = vmatpush1.bf16.msra.mxu1 %v5149_v48  ;;  %v5233_v47 = vld [vmem:[#allocation5 + $0xae8] ss:$16 sps:$4 sm:$0xff]   ;;  %v5236_v48 = vld [vmem:[#allocation5 + $0xb00] ss:$16 sps:$4 sm:$0xff]  }
 0x2a9   :  { %2644 = vmatprep.subr.bf16.mxu0 %v5154_v49  ;;  %2726 = vmatprep.subr.bf16.mxu1 %v5157_v50  ;;  %v5239_v49 = vld [vmem:[#allocation5 + $0xb08] ss:$16 sps:$4 sm:$0xff]   ;;  %v1807_v50 = vpack.c.bf16 %v1803_v52, %v1803_v52  ;;  %v5331_v52 = vld [vmem:[#allocation5 + $0xcec] ss:$16 sps:$4 sm:$0xff]  }
 0x2ac   :  { %2645 = vmatpush1.bf16.msra.mxu0 %v5152_v51  ;;  %2727 = vmatpush1.bf16.msra.mxu1 %v5155_v53  ;;  %v5247_v51 = vld [vmem:[#allocation5 + $0xb2c] ss:$16 sps:$4 sm:$0xff]   ;;  %v5242_v53 = vld [vmem:[#allocation5 + $0xb20] ss:$16 sps:$4 sm:$0xff]  }
 0x2ad   :  { %2646 = vmatprep.subr.bf16.mxu0 %v5160_v54  ;;  %2728 = vmatprep.subr.bf16.mxu1 %v5163_v55  ;;  %v5245_v54 = vld [vmem:[#allocation5 + $0xb28] ss:$16 sps:$4 sm:$0xff]   ;;  %v5250_v55 = vld [vmem:[#allocation5 + $0xb44] ss:$16 sps:$4 sm:$0xff]  }
 0x2b0   :  { %2647 = vmatpush1.bf16.msra.mxu0 %v5158_v57  ;;  %2729 = vmatpush1.bf16.msra.mxu1 %v5161_v58  ;;  %v5253_v57 = vld [vmem:[#allocation5 + $0xb4c] ss:$16 sps:$4 sm:$0xff]   ;;  %v5248_v58 = vld [vmem:[#allocation5 + $0xb40] ss:$16 sps:$4 sm:$0xff]  }
 0x2b1   :  { %2648 = vmatprep.subr.bf16.mxu0 %v5166_v59  ;;  %2730 = vmatprep.subr.bf16.mxu1 %v5169_v61  ;;  %v5251_v59 = vld [vmem:[#allocation5 + $0xb48] ss:$16 sps:$4 sm:$0xff]   ;;  %v5256_v61 = vld [vmem:[#allocation5 + $0xb64] ss:$16 sps:$4 sm:$0xff]  }
 0x2b4   :  { %2649 = vmatpush1.bf16.msra.mxu0 %v5164_v62  ;;  %2731 = vmatpush1.bf16.msra.mxu1 %v5167_v63  ;;  %v5259_v62 = vld [vmem:[#allocation5 + $0xb6c] ss:$16 sps:$4 sm:$0xff]   ;;  %v5254_v63 = vld [vmem:[#allocation5 + $0xb60] ss:$16 sps:$4 sm:$0xff]  }
 0x2b5   :  { %2650 = vmatprep.subr.bf16.mxu0 %v5172_v0  ;;  %2732 = vmatprep.subr.bf16.mxu1 %v5175_v1  ;;  %v5257_v0 = vld [vmem:[#allocation5 + $0xb68] ss:$16 sps:$4 sm:$0xff]   ;;  %v5262_v1 = vld [vmem:[#allocation5 + $0xb84] ss:$16 sps:$4 sm:$0xff]  }
 0x2b8   :  { %2651 = vmatpush1.bf16.msra.mxu0 %v5170_v2  ;;  %2733 = vmatpush1.bf16.msra.mxu1 %v5173_v3  ;;  %v5265_v2 = vld [vmem:[#allocation5 + $0xb8c] ss:$16 sps:$4 sm:$0xff]   ;;  %v5260_v3 = vld [vmem:[#allocation5 + $0xb80] ss:$16 sps:$4 sm:$0xff]  }
 0x2b9   :  { %2652 = vmatprep.subr.bf16.mxu0 %v5178_v5  ;;  %2734 = vmatprep.subr.bf16.mxu1 %v5181_v6  ;;  %v5263_v5 = vld [vmem:[#allocation5 + $0xb88] ss:$16 sps:$4 sm:$0xff]   ;;  %v5268_v6 = vld [vmem:[#allocation5 + $0xba4] ss:$16 sps:$4 sm:$0xff]  }
 0x2bc   :  { %2653 = vmatpush1.bf16.msra.mxu0 %v5176_v7  ;;  %2735 = vmatpush1.bf16.msra.mxu1 %v5179_v8  ;;  %v5271_v7 = vld [vmem:[#allocation5 + $0xbac] ss:$16 sps:$4 sm:$0xff]   ;;  %v5266_v8 = vld [vmem:[#allocation5 + $0xba0] ss:$16 sps:$4 sm:$0xff]  }
 0x2bd   :  { %2654 = vmatprep.subr.bf16.mxu0 %v5184_v9  ;;  %2736 = vmatprep.subr.bf16.mxu1 %v5187_v10  ;;  %v5269_v9 = vld [vmem:[#allocation5 + $0xba8] ss:$16 sps:$4 sm:$0xff]   ;;  %v5274_v10 = vld [vmem:[#allocation5 + $0xbc4] ss:$16 sps:$4 sm:$0xff]  }
 0x2c0   :  { %2655 = vmatpush1.bf16.msra.mxu0 %v5182_v11  ;;  %2737 = vmatpush1.bf16.msra.mxu1 %v5185_v12  ;;  %v5277_v11 = vld [vmem:[#allocation5 + $0xbcc] ss:$16 sps:$4 sm:$0xff]   ;;  %v5272_v12 = vld [vmem:[#allocation5 + $0xbc0] ss:$16 sps:$4 sm:$0xff]  }
 0x2c1   :  { %2656 = vmatprep.subr.bf16.mxu0 %v5190_v43  ;;  %2738 = vmatprep.subr.bf16.mxu1 %v5193_v13  ;;  %v5275_v43 = vld [vmem:[#allocation5 + $0xbc8] ss:$16 sps:$4 sm:$0xff]   ;;  %v5280_v13 = vld [vmem:[#allocation5 + $0xbe4] ss:$16 sps:$4 sm:$0xff]  }
 0x2c4   :  { %2657 = vmatpush1.bf16.msra.mxu0 %v5188_v14  ;;  %2739 = vmatpush1.bf16.msra.mxu1 %v5191_v15  ;;  %v5283_v14 = vld [vmem:[#allocation5 + $0xbec] ss:$16 sps:$4 sm:$0xff]   ;;  %v5278_v15 = vld [vmem:[#allocation5 + $0xbe0] ss:$16 sps:$4 sm:$0xff]  }
 0x2c5   :  { %2658 = vmatprep.subr.bf16.mxu0 %v5196_v16  ;;  %2740 = vmatprep.subr.bf16.mxu1 %v5199_v4  ;;  %v5281_v16 = vld [vmem:[#allocation5 + $0xbe8] ss:$16 sps:$4 sm:$0xff]   ;;  %v5286_v4 = vld [vmem:[#allocation5 + $0xc04] ss:$16 sps:$4 sm:$0xff]  }
 0x2c8   :  { %2659 = vmatpush1.bf16.msra.mxu0 %v5194_v17  ;;  %2741 = vmatpush1.bf16.msra.mxu1 %v5197_v18  ;;  %v5289_v17 = vld [vmem:[#allocation5 + $0xc0c] ss:$16 sps:$4 sm:$0xff]   ;;  %v5284_v18 = vld [vmem:[#allocation5 + $0xc00] ss:$16 sps:$4 sm:$0xff]  }
 0x2c9   :  { %2660 = vmatprep.subr.bf16.mxu0 %v5202_v19  ;;  %2742 = vmatprep.subr.bf16.mxu1 %v5205_v20  ;;  %v5287_v19 = vld [vmem:[#allocation5 + $0xc08] ss:$16 sps:$4 sm:$0xff]   ;;  %v5292_v20 = vld [vmem:[#allocation5 + $0xc24] ss:$16 sps:$4 sm:$0xff]  }
 0x2cc   :  { %2661 = vmatpush1.bf16.msra.mxu0 %v5200_v22  ;;  %2743 = vmatpush1.bf16.msra.mxu1 %v5203_v23  ;;  %v5295_v22 = vld [vmem:[#allocation5 + $0xc2c] ss:$16 sps:$4 sm:$0xff]   ;;  %v5290_v23 = vld [vmem:[#allocation5 + $0xc20] ss:$16 sps:$4 sm:$0xff]  }
 0x2cd   :  { %2662 = vmatprep.subr.bf16.mxu0 %v5208_v24  ;;  %2744 = vmatprep.subr.bf16.mxu1 %v5211_v25  ;;  %v5293_v24 = vld [vmem:[#allocation5 + $0xc28] ss:$16 sps:$4 sm:$0xff]   ;;  %v5298_v25 = vld [vmem:[#allocation5 + $0xc44] ss:$16 sps:$4 sm:$0xff]  }
 0x2d0   :  { %2663 = vmatpush1.bf16.msra.mxu0 %v5206_v27  ;;  %2745 = vmatpush1.bf16.msra.mxu1 %v5209_v28  ;;  %v5301_v27 = vld [vmem:[#allocation5 + $0xc4c] ss:$16 sps:$4 sm:$0xff]   ;;  %v5296_v28 = vld [vmem:[#allocation5 + $0xc40] ss:$16 sps:$4 sm:$0xff]  }
 0x2d1   :  { %2664 = vmatprep.subr.bf16.mxu0 %v5214_v29  ;;  %2746 = vmatprep.subr.bf16.mxu1 %v5217_v30  ;;  %v5299_v29 = vld [vmem:[#allocation5 + $0xc48] ss:$16 sps:$4 sm:$0xff]   ;;  %v5304_v30 = vld [vmem:[#allocation5 + $0xc64] ss:$16 sps:$4 sm:$0xff]  }
 0x2d4   :  { %2665 = vmatpush1.bf16.msra.mxu0 %v5212_v31  ;;  %2747 = vmatpush1.bf16.msra.mxu1 %v5215_v32  ;;  %v5307_v31 = vld [vmem:[#allocation5 + $0xc6c] ss:$16 sps:$4 sm:$0xff]   ;;  %v5302_v32 = vld [vmem:[#allocation5 + $0xc60] ss:$16 sps:$4 sm:$0xff]  }
 0x2d5   :  { %2666 = vmatprep.subr.bf16.mxu0 %v5220_v33  ;;  %2748 = vmatprep.subr.bf16.mxu1 %v5223_v34  ;;  %v5305_v33 = vld [vmem:[#allocation5 + $0xc68] ss:$16 sps:$4 sm:$0xff]   ;;  %v5310_v34 = vld [vmem:[#allocation5 + $0xc84] ss:$16 sps:$4 sm:$0xff]  }
 0x2d8   :  { %2667 = vmatpush1.bf16.msra.mxu0 %v5218_v42  ;;  %2749 = vmatpush1.bf16.msra.mxu1 %v5221_v35  ;;  %v5313_v42 = vld [vmem:[#allocation5 + $0xc8c] ss:$16 sps:$4 sm:$0xff]   ;;  %v5308_v35 = vld [vmem:[#allocation5 + $0xc80] ss:$16 sps:$4 sm:$0xff]  }
 0x2d9   :  { %2668 = vmatprep.subr.bf16.mxu0 %v5226_v41  ;;  %2750 = vmatprep.subr.bf16.mxu1 %v5229_v44  ;;  %v5316_v41 = vld [vmem:[#allocation5 + $0xca4] ss:$16 sps:$4 sm:$0xff]   ;;  %v5319_v44 = vld [vmem:[#allocation5 + $0xcac] ss:$16 sps:$4 sm:$0xff]  }
 0x2dc   :  { %2669 = vmatpush1.bf16.msra.mxu0 %v5224_v37  ;;  %2751 = vmatpush1.bf16.msra.mxu1 %v5227_v38  ;;  %v5314_v37 = vld [vmem:[#allocation5 + $0xca0] ss:$16 sps:$4 sm:$0xff]   ;;  %v5317_v38 = vld [vmem:[#allocation5 + $0xca8] ss:$16 sps:$4 sm:$0xff]  }
 0x2dd   :  { %2670 = vmatprep.subr.bf16.mxu0 %v5232_v56  ;;  %2752 = vmatprep.subr.bf16.mxu1 %v5235_v45  ;;  %v5325_v56 = vld [vmem:[#allocation5 + $0xccc] ss:$16 sps:$4 sm:$0xff]   ;;  %v5320_v45 = vld [vmem:[#allocation5 + $0xcc0] ss:$16 sps:$4 sm:$0xff]  }
 0x2e0   :  { %2671 = vmatpush1.bf16.msra.mxu0 %v5230_v46  ;;  %2753 = vmatpush1.bf16.msra.mxu1 %v5233_v47  ;;  %v5323_v46 = vld [vmem:[#allocation5 + $0xcc8] ss:$16 sps:$4 sm:$0xff]   ;;  %v5328_v47 = vld [vmem:[#allocation5 + $0xce4] ss:$16 sps:$4 sm:$0xff]  }
 0x2e1   :  { %3555 = vmatprep.subr.bf16.mxu0 %v5238_v60  ;;  %3637 = vmatprep.subr.bf16.mxu1 %v5241_v21  ;;  %v5326_v60 = vld [vmem:[#allocation5 + $0xce0] ss:$16 sps:$4 sm:$0xff]   ;;  %v5329_v21 = vld [vmem:[#allocation5 + $0xce8] ss:$16 sps:$4 sm:$0xff]  }
 0x2e3   :  { %2673 = vmatmul.mubr.bf16.vlgmr.msra.gmra.mrb[8].mxu0 %v1807_v50  ;;  %2755 = vmatmul.mubr.bf16.vlgmr.msra.gmra.mrb[8].mxu1 %v1807_v50  ;;  %v5707_v50 = vld [vmem:[#allocation8] sm:$0x22] }
 0x2e4   :  { %3556 = vmatpush1.bf16.msra.mxu0 %v5236_v48  ;;  %3638 = vmatpush1.bf16.msra.mxu1 %v5239_v49  ;;  %v5334_v48 = vld [vmem:[#allocation5 + $0xd04] ss:$16 sps:$4 sm:$0xff]   ;;  %v5337_v49 = vld [vmem:[#allocation5 + $0xd0c] ss:$16 sps:$4 sm:$0xff]  }
 0x2e5   :  { %3557 = vmatprep.subr.bf16.mxu0 %v5244_v26  ;;  %3639 = vmatprep.subr.bf16.mxu1 %v5247_v51  ;;  %v5709_v26 = vld [vmem:[#allocation8 + $0x8] sm:$0x22]  ;;  %v1939_v51 = vunpack.c.l.bf16 %v5707_v50 }
 0x2e8   :  { %3558 = vmatpush1.bf16.msra.mxu0 %v5242_v53  ;;  %3640 = vmatpush1.bf16.msra.mxu1 %v5245_v54  ;;  %v5713_v53 = vsub.s32 2, %v5661_v40  ;;  %v1940_v54 = vunpack.c.h.bf16 %v5707_v50 }
 0x2e9   :  { %3559 = vmatprep.subr.bf16.mxu0 %v5250_v55  ;;  %3641 = vmatprep.subr.bf16.mxu1 %v5253_v57  ;;  %v1942_v55 = vunpack.c.h.bf16 %v5709_v26 }
 0x2ea   :  { %v1946_v57 = vrot.slane %v1939_v51, %v5713_v53 }
 0x2ec   :  { %3560 = vmatpush1.bf16.msra.mxu0 %v5248_v58  ;;  %3642 = vmatpush1.bf16.msra.mxu1 %v5251_v59  ;;  %v1950_v58 = vrot.slane %v1940_v54, %v5713_v53  ;;  %v1958_v59 = vrot.slane %v1942_v55, %v5713_v53 }
 0x2ed   :  { %3561 = vmatprep.subr.bf16.mxu0 %v5256_v61  ;;  %3643 = vmatprep.subr.bf16.mxu1 %v5259_v62 }
 0x2f0   :  { %3562 = vmatpush1.bf16.msra.mxu0 %v5254_v63  ;;  %3644 = vmatpush1.bf16.msra.mxu1 %v5257_v0 }
 0x2f1   :  { %3563 = vmatprep.subr.bf16.mxu0 %v5262_v1  ;;  %3645 = vmatprep.subr.bf16.mxu1 %v5265_v2 }
 0x2f4   :  { %3564 = vmatpush1.bf16.msra.mxu0 %v5260_v3  ;;  %3646 = vmatpush1.bf16.msra.mxu1 %v5263_v5 }
 0x2f5   :  { %3565 = vmatprep.subr.bf16.mxu0 %v5268_v6  ;;  %3647 = vmatprep.subr.bf16.mxu1 %v5271_v7 }
 0x2f8   :  { %3566 = vmatpush1.bf16.msra.mxu0 %v5266_v8  ;;  %3648 = vmatpush1.bf16.msra.mxu1 %v5269_v9 }
 0x2f9   :  { %3567 = vmatprep.subr.bf16.mxu0 %v5274_v10  ;;  %3649 = vmatprep.subr.bf16.mxu1 %v5277_v11 }
 0x2fc   :  { %3568 = vmatpush1.bf16.msra.mxu0 %v5272_v12  ;;  %3650 = vmatpush1.bf16.msra.mxu1 %v5275_v43  ;;  %v5332_v43 = vld [vmem:[#allocation5 + $0xd00] ss:$16 sps:$4 sm:$0xff]  }
 0x2fd   :  { %3569 = vmatprep.subr.bf16.mxu0 %v5280_v13  ;;  %3651 = vmatprep.subr.bf16.mxu1 %v5283_v14  ;;  %v5335_v13 = vld [vmem:[#allocation5 + $0xd08] ss:$16 sps:$4 sm:$0xff]  }
 0x300   :  { %3570 = vmatpush1.bf16.msra.mxu0 %v5278_v15  ;;  %3652 = vmatpush1.bf16.msra.mxu1 %v5281_v16  ;;  %v5340_v15 = vld [vmem:[#allocation5 + $0xd24] ss:$16 sps:$4 sm:$0xff]   ;;  %v5343_v16 = vld [vmem:[#allocation5 + $0xd2c] ss:$16 sps:$4 sm:$0xff]  }
 0x301   :  { %3571 = vmatprep.subr.bf16.mxu0 %v5286_v4  ;;  %3653 = vmatprep.subr.bf16.mxu1 %v5289_v17  ;;  %v5338_v17 = vld [vmem:[#allocation5 + $0xd20] ss:$16 sps:$4 sm:$0xff]  }
 0x304   :  { %3572 = vmatpush1.bf16.msra.mxu0 %v5284_v18  ;;  %3654 = vmatpush1.bf16.msra.mxu1 %v5287_v19  ;;  %v5341_v18 = vld [vmem:[#allocation5 + $0xd28] ss:$16 sps:$4 sm:$0xff]   ;;  %v5346_v19 = vld [vmem:[#allocation5 + $0xd44] ss:$16 sps:$4 sm:$0xff]  }
 0x305   :  { %3573 = vmatprep.subr.bf16.mxu0 %v5292_v20  ;;  %3655 = vmatprep.subr.bf16.mxu1 %v5295_v22  ;;  %v5349_v20 = vld [vmem:[#allocation5 + $0xd4c] ss:$16 sps:$4 sm:$0xff]   ;;  %v5344_v22 = vld [vmem:[#allocation5 + $0xd40] ss:$16 sps:$4 sm:$0xff]  }
 0x308   :  { %3574 = vmatpush1.bf16.msra.mxu0 %v5290_v23  ;;  %3656 = vmatpush1.bf16.msra.mxu1 %v5293_v24  ;;  %v5347_v23 = vld [vmem:[#allocation5 + $0xd48] ss:$16 sps:$4 sm:$0xff]   ;;  %v5352_v24 = vld [vmem:[#allocation5 + $0xd64] ss:$16 sps:$4 sm:$0xff]  }
 0x309   :  { %3575 = vmatprep.subr.bf16.mxu0 %v5298_v25  ;;  %3657 = vmatprep.subr.bf16.mxu1 %v5301_v27  ;;  %v5355_v25 = vld [vmem:[#allocation5 + $0xd6c] ss:$16 sps:$4 sm:$0xff]   ;;  %v5350_v27 = vld [vmem:[#allocation5 + $0xd60] ss:$16 sps:$4 sm:$0xff]  }
 0x30c   :  { %3576 = vmatpush1.bf16.msra.mxu0 %v5296_v28  ;;  %3658 = vmatpush1.bf16.msra.mxu1 %v5299_v29  ;;  %v5353_v28 = vld [vmem:[#allocation5 + $0xd68] ss:$16 sps:$4 sm:$0xff]   ;;  %v5358_v29 = vld [vmem:[#allocation5 + $0xd84] ss:$16 sps:$4 sm:$0xff]  }
 0x30d   :  { %3577 = vmatprep.subr.bf16.mxu0 %v5304_v30  ;;  %3659 = vmatprep.subr.bf16.mxu1 %v5307_v31  ;;  %v5361_v30 = vld [vmem:[#allocation5 + $0xd8c] ss:$16 sps:$4 sm:$0xff]   ;;  %v5356_v31 = vld [vmem:[#allocation5 + $0xd80] ss:$16 sps:$4 sm:$0xff]  }
 0x310   :  { %3578 = vmatpush1.bf16.msra.mxu0 %v5302_v32  ;;  %3660 = vmatpush1.bf16.msra.mxu1 %v5305_v33  ;;  %v5359_v32 = vld [vmem:[#allocation5 + $0xd88] ss:$16 sps:$4 sm:$0xff]   ;;  %v5364_v33 = vld [vmem:[#allocation5 + $0xda4] ss:$16 sps:$4 sm:$0xff]  }
 0x311   :  { %3579 = vmatprep.subr.bf16.mxu0 %v5310_v34  ;;  %3661 = vmatprep.subr.bf16.mxu1 %v5313_v42  ;;  %v5367_v34 = vld [vmem:[#allocation5 + $0xdac] ss:$16 sps:$4 sm:$0xff]   ;;  %v5362_v42 = vld [vmem:[#allocation5 + $0xda0] ss:$16 sps:$4 sm:$0xff]  }
 0x314   :  { %3580 = vmatpush1.bf16.msra.mxu0 %v5308_v35  ;;  %3662 = vmatpush1.bf16.msra.mxu1 %v5311_v36  ;;  %v5365_v35 = vld [vmem:[#allocation5 + $0xda8] ss:$16 sps:$4 sm:$0xff]   ;;  %v5370_v36 = vld [vmem:[#allocation5 + $0xdc4] ss:$16 sps:$4 sm:$0xff]  }
 0x315   :  { %3581 = vmatprep.subr.bf16.mxu0 %v5316_v41  ;;  %3663 = vmatprep.subr.bf16.mxu1 %v5319_v44  ;;  %v5373_v41 = vld [vmem:[#allocation5 + $0xdcc] ss:$16 sps:$4 sm:$0xff]   ;;  %v5368_v44 = vld [vmem:[#allocation5 + $0xdc0] ss:$16 sps:$4 sm:$0xff]  }
 0x318   :  { %3582 = vmatpush1.bf16.msra.mxu0 %v5314_v37  ;;  %3664 = vmatpush1.bf16.msra.mxu1 %v5317_v38  ;;  %v5371_v37 = vld [vmem:[#allocation5 + $0xdc8] ss:$16 sps:$4 sm:$0xff]   ;;  %v5376_v38 = vld [vmem:[#allocation5 + $0xde4] ss:$16 sps:$4 sm:$0xff]  }
 0x319   :  { %3583 = vmatprep.subr.bf16.mxu0 %v5322_v39  ;;  %3665 = vmatprep.subr.bf16.mxu1 %v5325_v56  ;;  %v5379_v39 = vld [vmem:[#allocation5 + $0xdec] ss:$16 sps:$4 sm:$0xff]   ;;  %v5374_v56 = vld [vmem:[#allocation5 + $0xde0] ss:$16 sps:$4 sm:$0xff]  }
 0x31c   :  { %3584 = vmatpush1.bf16.msra.mxu0 %v5320_v45  ;;  %3666 = vmatpush1.bf16.msra.mxu1 %v5323_v46  ;;  %v5377_v45 = vld [vmem:[#allocation5 + $0xde8] ss:$16 sps:$4 sm:$0xff]   ;;  %v5382_v46 = vld [vmem:[#allocation5 + $0xe04] ss:$16 sps:$4 sm:$0xff]  }
 0x31d   :  { %3585 = vmatprep.subr.bf16.mxu0 %v5328_v47  ;;  %3667 = vmatprep.subr.bf16.mxu1 %v5331_v52  ;;  %v5385_v47 = vld [vmem:[#allocation5 + $0xe0c] ss:$16 sps:$4 sm:$0xff]   ;;  %v5380_v52 = vld [vmem:[#allocation5 + $0xe00] ss:$16 sps:$4 sm:$0xff]  }
 0x320   :  { %3586 = vmatpush1.bf16.msra.mxu0 %v5326_v60  ;;  %3668 = vmatpush1.bf16.msra.mxu1 %v5329_v21  ;;  %v5383_v60 = vld [vmem:[#allocation5 + $0xe08] ss:$16 sps:$4 sm:$0xff]   ;;  %v5388_v21 = vld [vmem:[#allocation5 + $0xe24] ss:$16 sps:$4 sm:$0xff]  }
 0x321   :  { %3596 = vmatprep.subr.bf16.mxu0 %v5334_v48  ;;  %3678 = vmatprep.subr.bf16.mxu1 %v5337_v49  ;;  %v5391_v48 = vld [vmem:[#allocation5 + $0xe2c] ss:$16 sps:$4 sm:$0xff]   ;;  %v5386_v49 = vld [vmem:[#allocation5 + $0xe20] ss:$16 sps:$4 sm:$0xff]  }
 0x3b6   :  { %v2674_v61 = vpop.f32.mrb[8].mxu0  ;;  %v5726_v62 = vpop.f32.mrb[8].mxu1 }
 0x3b7   :  { %v4655_v63 = vadd.f32 %v2674_v61, %v1946_v57  ;;  %v2676_v0 = vpop.f32.mrb[9].mxu0  ;;  %v2758_v1 = vpop.f32.mrb[9].mxu1  ;;  %v5389_v57 = vld [vmem:[#allocation5 + $0xe28] ss:$16 sps:$4 sm:$0xff]   ;;  %v5392_v61 = vld [vmem:[#allocation5 + $0xe40] ss:$16 sps:$4 sm:$0xff]  }
 0x3b8   :  { %v4656_v2 = vadd.f32 %v2676_v0, %v1950_v58  ;;  %v4658_v3 = vadd.f32 %v2758_v1, %v1958_v59  ;;  %v2678_v5 = vpop.f32.mrb[10].mxu0  ;;  %v2760_v6 = vpop.f32.mrb[10].mxu1  ;;  %v5394_v58 = vld [vmem:[#allocation5 + $0xe44] ss:$16 sps:$4 sm:$0xff]   ;;  %v5397_v59 = vld [vmem:[#allocation5 + $0xe4c] ss:$16 sps:$4 sm:$0xff]  }
 0x3b9   :  { %v2763_v7 = vmax.f32 %v4655_v63, 0.0  ;;  %v2679_v8 = vpop.f32.mrb[11].mxu0  ;;  %v2761_v9 = vpop.f32.mrb[11].mxu1  ;;  %v5395_v63 = vld [vmem:[#allocation5 + $0xe48] ss:$16 sps:$4 sm:$0xff]  }
 0x3ba   :  { %v2764_v10 = vmax.f32 %v4656_v2, 0.0  ;;  %v2766_v11 = vmax.f32 %v4658_v3, 0.0  ;;  %v5400_v0 = vld [vmem:[#allocation5 + $0xe64] ss:$16 sps:$4 sm:$0xff]   ;;  %v5403_v1 = vld [vmem:[#allocation5 + $0xe6c] ss:$16 sps:$4 sm:$0xff]   ;;  %v1941_v9 = vunpack.c.l.bf16 %v5709_v26 }
 0x3bb   :  { %v2767_v14 = vpack.c.bf16 %v2763_v7, %v2763_v7  ;;  %v5398_v2 = vld [vmem:[#allocation5 + $0xe60] ss:$16 sps:$4 sm:$0xff]   ;;  %v5401_v3 = vld [vmem:[#allocation5 + $0xe68] ss:$16 sps:$4 sm:$0xff]   ;;  %v5406_v5 = vld [vmem:[#allocation5 + $0xe84] ss:$16 sps:$4 sm:$0xff]  }
 0x3bc   :  { %v2768_v12 = vpack.c.bf16 %v2764_v10, %v2764_v10  ;;  %v2770_v4 = vpack.c.bf16 %v2766_v11, %v2766_v11  ;;  %v5409_v6 = vld [vmem:[#allocation5 + $0xe8c] ss:$16 sps:$4 sm:$0xff]   ;;  %v5404_v7 = vld [vmem:[#allocation5 + $0xe80] ss:$16 sps:$4 sm:$0xff]   ;;  %v5407_v8 = vld [vmem:[#allocation5 + $0xe88] ss:$16 sps:$4 sm:$0xff]  }
 0x3bd   :  { %v5412_v10 = vld [vmem:[#allocation5 + $0xea4] ss:$16 sps:$4 sm:$0xff]   ;;  %v5415_v11 = vld [vmem:[#allocation5 + $0xeac] ss:$16 sps:$4 sm:$0xff]  }
 0x3be   :  { %3587 = vmatprep.mubr.bf16.mxu0 %v2768_v12  ;;  %3669 = vmatprep.mubr.bf16.mxu1 %v2768_v12  ;;  %v5410_v12 = vld [vmem:[#allocation5 + $0xea0] ss:$16 sps:$4 sm:$0xff]  }
 0x3bf   :  { %3588 = vmatmul.mubr.bf16.vlgmr.msra.gmra.mrb[12].mxu0 %v2767_v14  ;;  %3670 = vmatmul.mubr.bf16.vlgmr.msra.gmra.mrb[12].mxu1 %v2767_v14  ;;  %v5418_v14 = vld [vmem:[#allocation5 + $0xec4] ss:$16 sps:$4 sm:$0xff]  }
 0x3c0   :  { %3597 = vmatpush1.bf16.msra.mxu0 %v5332_v43  ;;  %3679 = vmatpush1.bf16.msra.mxu1 %v5335_v13  ;;  %v5413_v43 = vld [vmem:[#allocation5 + $0xea8] ss:$16 sps:$4 sm:$0xff]   ;;  %v1954_v13 = vrot.slane %v1941_v9, %v5713_v53  ;;  %v5428_v53 = vld [vmem:[#allocation7 + $0x40] sm:$0xff]  }
 0x3c1   :  { %3628 = vmatprep.mubr.bf16.mxu0 %v2770_v4  ;;  %3710 = vmatprep.mubr.bf16.mxu1 %v2770_v4  ;;  %v5419_v4 = vld [vmem:[#allocation5 + $0xec8] ss:$16 sps:$4 sm:$0xff]  }
 0x3c2   :  { %3598 = vmatprep.subr.bf16.mxu0 %v5340_v15  ;;  %3680 = vmatprep.subr.bf16.mxu1 %v5343_v16  ;;  %v5421_v15 = vld [vmem:[#allocation5 + $0xecc] ss:$16 sps:$4 sm:$0xff]   ;;  %v5416_v16 = vld [vmem:[#allocation5 + $0xec0] ss:$16 sps:$4 sm:$0xff]  }
 0x3c4   :  { %3599 = vmatpush1.bf16.msra.mxu0 %v5338_v17  ;;  %3681 = vmatpush1.bf16.msra.mxu1 %v5341_v18  ;;  %v4657_v17 = vadd.f32 %v5726_v62, %v1954_v13  ;;  %v5424_v18 = vld [vmem:[#allocation5 + $0xee4] ss:$16 sps:$4 sm:$0xff]   ;;  %v5432_v62 = vld [vmem:[#allocation7 + $0x48] sm:$0xff]  }
 0x3c5   :  { %3600 = vmatprep.subr.bf16.mxu0 %v5346_v19  ;;  %3682 = vmatprep.subr.bf16.mxu1 %v5349_v20  ;;  %v5427_v19 = vld [vmem:[#allocation5 + $0xeec] ss:$16 sps:$4 sm:$0xff]   ;;  %v5422_v20 = vld [vmem:[#allocation5 + $0xee0] ss:$16 sps:$4 sm:$0xff]  }
 0x3c8   :  { %3601 = vmatpush1.bf16.msra.mxu0 %v5344_v22  ;;  %3683 = vmatpush1.bf16.msra.mxu1 %v5347_v23  ;;  %v5425_v22 = vld [vmem:[#allocation5 + $0xee8] ss:$16 sps:$4 sm:$0xff]   ;;  %v2765_v23 = vmax.f32 %v4657_v17, 0.0 }
 0x3c9   :  { %3602 = vmatprep.subr.bf16.mxu0 %v5352_v24  ;;  %3684 = vmatprep.subr.bf16.mxu1 %v5355_v25  ;;  %v5429_v24 = vld [vmem:[#allocation7 + $0xc0] sm:$0xff]  }
 0x3ca   :  { %v5430_v25 = vld [vmem:[#allocation7] sm:$0xff]  }
 0x3cc   :  { %3603 = vmatpush1.bf16.msra.mxu0 %v5350_v27  ;;  %3685 = vmatpush1.bf16.msra.mxu1 %v5353_v28  ;;  %v5431_v27 = vld [vmem:[#allocation7 + $0x80] sm:$0xff]   ;;  %v2769_v28 = vpack.c.bf16 %v2765_v23, %v2765_v23 }
 0x3cd   :  { %3604 = vmatprep.subr.bf16.mxu0 %v5358_v29  ;;  %3686 = vmatprep.subr.bf16.mxu1 %v5361_v30  ;;  %v5433_v29 = vld [vmem:[#allocation7 + $0xc8] sm:$0xff]  }
 0x3ce   :  { %v5434_v30 = vld [vmem:[#allocation7 + $0x8] sm:$0xff]  }
 0x3d0   :  { %3605 = vmatpush1.bf16.msra.mxu0 %v5356_v31  ;;  %3687 = vmatpush1.bf16.msra.mxu1 %v5359_v32  ;;  %v5435_v31 = vld [vmem:[#allocation7 + $0x88] sm:$0xff]   ;;  %v5436_v32 = vld [vmem:[#allocation7 + $0x50] sm:$0xff]  }
 0x3d1   :  { %3606 = vmatprep.subr.bf16.mxu0 %v5364_v33  ;;  %3688 = vmatprep.subr.bf16.mxu1 %v5367_v34  ;;  %v5437_v33 = vld [vmem:[#allocation7 + $0xd0] sm:$0xff]  }
 0x3d2   :  { %v5438_v34 = vld [vmem:[#allocation7 + $0x10] sm:$0xff]  }
 0x3d4   :  { %3607 = vmatpush1.bf16.msra.mxu0 %v5362_v42  ;;  %3689 = vmatpush1.bf16.msra.mxu1 %v5365_v35  ;;  %v5439_v42 = vld [vmem:[#allocation7 + $0x90] sm:$0xff]   ;;  %v5440_v35 = vld [vmem:[#allocation7 + $0x58] sm:$0xff]  }
 0x3d5   :  { %3608 = vmatprep.subr.bf16.mxu0 %v5370_v36  ;;  %3690 = vmatprep.subr.bf16.mxu1 %v5373_v41  ;;  %v5441_v36 = vld [vmem:[#allocation7 + $0xd8] sm:$0xff]  }
 0x3d6   :  { %v5442_v41 = vld [vmem:[#allocation7 + $0x18] sm:$0xff]  }
 0x3d8   :  { %3609 = vmatpush1.bf16.msra.mxu0 %v5368_v44  ;;  %3691 = vmatpush1.bf16.msra.mxu1 %v5371_v37  ;;  %v5443_v44 = vld [vmem:[#allocation7 + $0x98] sm:$0xff]   ;;  %v5444_v37 = vld [vmem:[#allocation7 + $0x60] sm:$0xff]  }
 0x3d9   :  { %3610 = vmatprep.subr.bf16.mxu0 %v5376_v38  ;;  %3692 = vmatprep.subr.bf16.mxu1 %v5379_v39  ;;  %v5445_v38 = vld [vmem:[#allocation7 + $0xe0] sm:$0xff]  }
 0x3da   :  { %v5446_v39 = vld [vmem:[#allocation7 + $0x20] sm:$0xff]  }
 0x3dc   :  { %3611 = vmatpush1.bf16.msra.mxu0 %v5374_v56  ;;  %3693 = vmatpush1.bf16.msra.mxu1 %v5377_v45  ;;  %v5447_v56 = vld [vmem:[#allocation7 + $0xa0] sm:$0xff]   ;;  %v5448_v45 = vld [vmem:[#allocation7 + $0x68] sm:$0xff]  }
 0x3dd   :  { %3612 = vmatprep.subr.bf16.mxu0 %v5382_v46  ;;  %3694 = vmatprep.subr.bf16.mxu1 %v5385_v47  ;;  %v5449_v46 = vld [vmem:[#allocation7 + $0xe8] sm:$0xff]  }
 0x3de   :  { %v5450_v47 = vld [vmem:[#allocation7 + $0x28] sm:$0xff]  }
 0x3e0   :  { %3613 = vmatpush1.bf16.msra.mxu0 %v5380_v52  ;;  %3695 = vmatpush1.bf16.msra.mxu1 %v5383_v60  ;;  %v5451_v52 = vld [vmem:[#allocation7 + $0xa8] sm:$0xff]   ;;  %v5452_v60 = vld [vmem:[#allocation7 + $0x70] sm:$0xff]  }
 0x3e1   :  { %3614 = vmatprep.subr.bf16.mxu0 %v5388_v21  ;;  %3696 = vmatprep.subr.bf16.mxu1 %v5391_v48  ;;  %v5453_v21 = vld [vmem:[#allocation7 + $0xf0] sm:$0xff]  }
 0x3e2   :  { %v5454_v48 = vld [vmem:[#allocation7 + $0x30] sm:$0xff]  }
 0x3e4   :  { %3615 = vmatpush1.bf16.msra.mxu0 %v5386_v49  ;;  %3697 = vmatpush1.bf16.msra.mxu1 %v5389_v57  ;;  %v5455_v49 = vld [vmem:[#allocation7 + $0xb0] sm:$0xff]   ;;  %v5456_v57 = vld [vmem:[#allocation7 + $0x78] sm:$0xff]  }
 0x3e5   :  { %3616 = vmatprep.subr.bf16.mxu0 %v5394_v58  ;;  %3698 = vmatprep.subr.bf16.mxu1 %v5397_v59  ;;  %v5457_v58 = vld [vmem:[#allocation7 + $0xf8] sm:$0xff]  }
 0x3e6   :  { %v5458_v59 = vld [vmem:[#allocation7 + $0x38] sm:$0xff]  }
 0x3e8   :  { %3617 = vmatpush1.bf16.msra.mxu0 %v5392_v61  ;;  %3699 = vmatpush1.bf16.msra.mxu1 %v5395_v63  ;;  %v5459_v61 = vld [vmem:[#allocation7 + $0xb8] sm:$0xff]   ;;  %v2901_v63 = vsub.s32 3, %v5661_v40 }
 0x3e9   :  { %3618 = vmatprep.subr.bf16.mxu0 %v5400_v0  ;;  %3700 = vmatprep.subr.bf16.mxu1 %v5403_v1 }
 0x3ea   :  { %v2902_v0 = vrot.slane %v1939_v51, %v2901_v63  ;;  %v2910_v1 = vrot.slane %v1941_v9, %v2901_v63 }
 0x3ec   :  { %3619 = vmatpush1.bf16.msra.mxu0 %v5398_v2  ;;  %3701 = vmatpush1.bf16.msra.mxu1 %v5401_v3  ;;  %v2906_v2 = vrot.slane %v1940_v54, %v2901_v63  ;;  %v2914_v3 = vrot.slane %v1942_v55, %v2901_v63 }
 0x3ed   :  { %3620 = vmatprep.subr.bf16.mxu0 %v5406_v5  ;;  %3702 = vmatprep.subr.bf16.mxu1 %v5409_v6 }
 0x3f0   :  { %3621 = vmatpush1.bf16.msra.mxu0 %v5404_v7  ;;  %3703 = vmatpush1.bf16.msra.mxu1 %v5407_v8 }
 0x3f1   :  { %3622 = vmatprep.subr.bf16.mxu0 %v5412_v10  ;;  %3704 = vmatprep.subr.bf16.mxu1 %v5415_v11 }
 0x3f4   :  { %3623 = vmatpush1.bf16.msra.mxu0 %v5410_v12  ;;  %3705 = vmatpush1.bf16.msra.mxu1 %v5413_v43 }
 0x3f5   :  { %3624 = vmatprep.subr.bf16.mxu0 %v5418_v14  ;;  %3706 = vmatprep.subr.bf16.mxu1 %v5421_v15 }
 0x3f8   :  { %3625 = vmatpush1.bf16.msra.mxu0 %v5416_v16  ;;  %3707 = vmatpush1.bf16.msra.mxu1 %v5419_v4 }
 0x3f9   :  { %3626 = vmatprep.subr.bf16.mxu0 %v5424_v18  ;;  %3708 = vmatprep.subr.bf16.mxu1 %v5427_v19  ;;  %v3791_v18 = vld [vmem:[#allocation8] sm:$0x4] }
 0x3fa   :  { %v3792_v19 = vunpack.c.l.bf16 %v3791_v18 }
 0x3fc   :  { %3627 = vmatpush1.bf16.msra.mxu0 %v5422_v20  ;;  %3709 = vmatpush1.bf16.msra.mxu1 %v5425_v22  ;;  %v3795_v20 = vsub.s32 4, %v5661_v40 }
 0x3fd   :  { %4603 = vmatprep.subr.bf16.mxu0 %v5428_v53  ;;  %4625 = vmatprep.subr.bf16.mxu1 %v5429_v24 }
 0x3fe   :  { %v3796_v53 = vrot.slane %v3792_v19, %v3795_v20 }
 0x3ff   :  { %3629 = vmatmul.mubr.bf16.vlgmr.msra.gmra.mrb[12].mxu0 %v2769_v28  ;;  %3711 = vmatmul.mubr.bf16.vlgmr.msra.gmra.mrb[12].mxu1 %v2769_v28 }
 0x400   :  { %4604 = vmatpush3.bf16.msra.mxu0 %v5430_v25  ;;  %4626 = vmatpush3.bf16.msra.mxu1 %v5431_v27 }
 0x401   :  { %4605 = vmatprep.subr.bf16.mxu0 %v5432_v62  ;;  %4627 = vmatprep.subr.bf16.mxu1 %v5433_v29 }
 0x404   :  { %4606 = vmatpush3.bf16.msra.mxu0 %v5434_v30  ;;  %4628 = vmatpush3.bf16.msra.mxu1 %v5435_v31 }
 0x405   :  { %4607 = vmatprep.subr.bf16.mxu0 %v5436_v32  ;;  %4629 = vmatprep.subr.bf16.mxu1 %v5437_v33 }
 0x408   :  { %4608 = vmatpush3.bf16.msra.mxu0 %v5438_v34  ;;  %4630 = vmatpush3.bf16.msra.mxu1 %v5439_v42 }
 0x409   :  { %4609 = vmatprep.subr.bf16.mxu0 %v5440_v35  ;;  %4631 = vmatprep.subr.bf16.mxu1 %v5441_v36 }
 0x40c   :  { %4610 = vmatpush3.bf16.msra.mxu0 %v5442_v41  ;;  %4632 = vmatpush3.bf16.msra.mxu1 %v5443_v44 }
 0x40d   :  { %4611 = vmatprep.subr.bf16.mxu0 %v5444_v37  ;;  %4633 = vmatprep.subr.bf16.mxu1 %v5445_v38 }
 0x410   :  { %4612 = vmatpush3.bf16.msra.mxu0 %v5446_v39  ;;  %4634 = vmatpush3.bf16.msra.mxu1 %v5447_v56 }
 0x411   :  { %4613 = vmatprep.subr.bf16.mxu0 %v5448_v45  ;;  %4635 = vmatprep.subr.bf16.mxu1 %v5449_v46 }
 0x414   :  { %4614 = vmatpush3.bf16.msra.mxu0 %v5450_v47  ;;  %4636 = vmatpush3.bf16.msra.mxu1 %v5451_v52 }
 0x415   :  { %4615 = vmatprep.subr.bf16.mxu0 %v5452_v60  ;;  %4637 = vmatprep.subr.bf16.mxu1 %v5453_v21 }
 0x418   :  { %4616 = vmatpush3.bf16.msra.mxu0 %v5454_v48  ;;  %4638 = vmatpush3.bf16.msra.mxu1 %v5455_v49 }
 0x419   :  { %4617 = vmatprep.subr.bf16.mxu0 %v5456_v57  ;;  %4639 = vmatprep.subr.bf16.mxu1 %v5457_v58 }
 0x41c   :  { %4618 = vmatpush3.bf16.msra.mxu0 %v5458_v59  ;;  %4640 = vmatpush3.bf16.msra.mxu1 %v5459_v61 }
 0x4d2   :  { %v3630_v5 = vpop.f32.mrb[12].mxu0  ;;  %v3712_v6 = vpop.f32.mrb[12].mxu1 }
 0x4d3   :  { %v4659_v7 = vadd.f32 %v3630_v5, %v2902_v0  ;;  %v4661_v8 = vadd.f32 %v3712_v6, %v2910_v1  ;;  %v3632_v10 = vpop.f32.mrb[13].mxu0  ;;  %v3714_v11 = vpop.f32.mrb[13].mxu1 }
 0x4d4   :  { %v4660_v12 = vadd.f32 %v3632_v10, %v2906_v2  ;;  %v4662_v43 = vadd.f32 %v3714_v11, %v2914_v3  ;;  %v3634_v13 = vpop.f32.mrb[14].mxu0  ;;  %v3716_v14 = vpop.f32.mrb[14].mxu1 }
 0x4d5   :  { %v3719_v51 = vmax.f32 %v4659_v7, 0.0  ;;  %v3721_v15 = vmax.f32 %v4661_v8, 0.0  ;;  %v3635_v16 = vpop.f32.mrb[15].mxu0  ;;  %v3717_v9 = vpop.f32.mrb[15].mxu1 }
 0x4d6   :  { %v3720_v4 = vmax.f32 %v4660_v12, 0.0  ;;  %v3722_v50 = vmax.f32 %v4662_v43, 0.0 }
 0x4d7   :  { %v3723_v26 = vpack.c.bf16 %v3719_v51, %v3719_v51  ;;  %v3725_v55 = vpack.c.bf16 %v3721_v15, %v3721_v15 }
 0x4d8   :  { %v3724_v54 = vpack.c.bf16 %v3720_v4, %v3720_v4  ;;  %v3726_v17 = vpack.c.bf16 %v3722_v50, %v3722_v50 }
 0x4da   :  { %4021 = vmatprep.mubr.bf16.mxu0 %v3724_v54  ;;  %4061 = vmatprep.mubr.bf16.mxu1 %v3726_v17 }
 0x4db   :  { %4022 = vmatmul.mubr.bf16.vlgmr.msra.gmra.mrb[16].mxu0 %v3723_v26  ;;  %4062 = vmatmul.mubr.bf16.vlgmr.msra.gmra.mrb[16].mxu1 %v3725_v55 }
 0x5ae   :  { %v4619_v22 = vpop.f32.mrb[16].mxu0  ;;  %v4641_v23 = vpop.f32.mrb[16].mxu1 }
 0x5af   :  { %v4620_v24 = vpop.f32.mrb[17].mxu0  ;;  %v4642_v25 = vpop.f32.mrb[17].mxu1 }
 0x5b0   :  { %v4621_v27 = vadd.f32 %v4620_v24, %v4619_v22  ;;  %v4643_v28 = vadd.f32 %v4642_v25, %v4641_v23  ;;  %v4622_v62 = vpop.f32.mrb[18].mxu0  ;;  %v4644_v29 = vpop.f32.mrb[18].mxu1 }
 0x5b1   :  { %v4623_v30 = vpop.f32.mrb[19].mxu0  ;;  %v4645_v31 = vpop.f32.mrb[19].mxu1 }
 0x5b2   :  { %v4024_v32 = vadd.f32 %v4621_v27, %v3796_v53 }
 0x5b4   :  { %v4064_v33 = vadd.f32 %v4643_v28, %v4024_v32 }
 0x5b6   :  { %v4069_v34 = vmax.f32 %v4064_v33, 0.0 }
 0x5b8   :  { %4070 = vst [vmem:[#allocation10] sm:$0xff] %v4069_v34 }
 0x5b9   :  { %5559 = shalt.err (!%p5556_p8)
}
 0x5ba   :  { %s5560_s15 = scalar_lea.hbm %s5759_s4, 128 }
 0x5bb   :  { %p5561_p9 = scmp.ne.s32.totalorder %s5759_s4, %s5560_s15  ;;  %p5564_p10 = scmp.lt.u32.totalorder %s5560_s15, %s5759_s4 }
 0x5bd   :  { %p5566_p11 = pnand %p5564_p10, %p5561_p9 }
 0x5bf   :  { %5569 = shalt.err (!%p5566_p11)
}
 0x5c0   :  { %4080 = dma.vmem_to_hbm [thread:$0]  %s4078_s12, 128, %s5759_s4, [#allocation4]  }
 0x5c1   :  { %5576 = dma.done.wait [#allocation4], 128  }
 0x5c2   :  { %5577 = vsyncadd [#allocation4], 4294967168 }
 0x5c3   :  { %4084 = vsyncpa [#allocation3], 1 }
 0x5c4   :  { %4085 = vsyncpa [#allocation6], 1 }
 0x5c5   :  { %4086 = vsyncpa [#allocation9], 1 }
 0x5c6   :  { %4087 = vsyncpa [#allocation4], 1 }

</bundles_post_ra>
